<compile_context>
chip_gen: v6e
topology: v6e:2x2x1
jax: 0.10.0
libtpu: 0.0.40
codegen_flags: <defaults>
</compile_context>

<pallas_src>
import functools

import jax
import jax.numpy as jnp
from jax import lax
from jax.experimental import pallas as pl
from jax.experimental.pallas import tpu as pltpu


# --------------------------- fused per-batch kernel ---------------------------
def _gsa_fused_kernel(x_ref, wqkv_ref, cstats_ref, rvecs_ref, wlpg_ref,
                      wproj_ref, o_ref, a_ref, *, heads, head_dim, r2,
                      eps=1e-5):
    # x_ref:      (1, C, Np)     bf16  pooled tokens of batch b, channels-first
    # wqkv_ref:   (3C, C)        bf16  qkv weight, reordered [Q | K | V] blocks
    # cstats_ref: (C, 3)         f32   [sum_k wlp, sum_k wlp^2, blp*sum_k wlp]
    # rvecs_ref:  (3, C)         f32   rows: [blp, gn_w, gn_b]
    # wlpg_ref:   (r2, C)        f32   (wlp * gn_w)^T  per-tap proj column scale
    # wproj_ref:  (C, C)         f32   proj 1x1-conv weight
    # o_ref:      (1, r2, C, Np) f32   per-tap, channels-first output slabs
    # a_ref:      (C, Np)        f32   VMEM scratch: attention output
    c_dim = heads * head_dim
    np_dim = a_ref.shape[1]

    x = x_ref[0]                                               # (C, Np) bf16

    # ---- qkv for ALL heads: one (3C, C) x (C, Np) matmul, f32 accumulate ----
    qkv = jnp.dot(wqkv_ref[...], x,
                  preferred_element_type=jnp.float32)          # (3C, Np) f32

    # ---- per-head attention (reference applies NO scale) --------------------
    for h in range(heads):
        q = qkv[h * head_dim:(h + 1) * head_dim]               # (hd, Np)
        k = qkv[c_dim + h * head_dim:c_dim + (h + 1) * head_dim]
        v = qkv[2 * c_dim + h * head_dim:2 * c_dim + (h + 1) * head_dim]
        # s[j, i] = sum_d k[d, j] * q[d, i]   (keys on sublanes, queries on lanes)
        s = lax.dot_general(k, q, (((0,), (0,)), ((), ())),
                            preferred_element_type=jnp.float32)  # (Np_k, Np_q)
        m = jnp.max(s, axis=0, keepdims=True)                    # (1, Np_q)
        e = jnp.exp(s - m)
        l = jnp.sum(e, axis=0, keepdims=True)                    # (1, Np_q)
        # PV first, then normalise the small (hd, Np) result (EUP reciprocal).
        oh = jnp.dot(v, e, preferred_element_type=jnp.float32)   # (hd, Np)
        a_ref[h * head_dim:(h + 1) * head_dim, :] = (
            oh * pl.reciprocal(l, approx=True))

    a = a_ref[...]                                             # (C, Np) f32

    # ---- GroupNorm(num_groups=1) statistics in closed form ------------------
    # local_prop tap kk:  y_kk[c, n] = a[c, n] * wlp[c, kk] + blp[c]
    # mean / biased var over all (kk, c, n) follow from row-sums of a and a^2.
    wsum = cstats_ref[:, 0:1]                                  # (C, 1)
    w2sum = cstats_ref[:, 1:2]                                 # (C, 1)
    blpw = cstats_ref[:, 2:3]                                  # (C, 1)
    blp_row = rvecs_ref[0:1, :]                                # (1, C)
    gnw_row = rvecs_ref[1:2, :]                                # (1, C)
    gnb_row = rvecs_ref[2:3, :]                                # (1, C)

    total = float(c_dim * np_dim * r2)
    npr2 = float(np_dim * r2)
    rs_a = jnp.sum(a, axis=1, keepdims=True)                   # (C, 1)
    rs_a2 = jnp.sum(a * a, axis=1, keepdims=True)              # (C, 1)

    s1 = jnp.sum(wsum * rs_a)
    s2 = jnp.sum(w2sum * rs_a2)
    s3 = jnp.sum(blpw * rs_a)
    sum_b = jnp.sum(blp_row)
    sum_b2 = jnp.sum(blp_row * blp_row)

    mean = (s1 + npr2 * sum_b) / total
    var = (s2 + 2.0 * (s3 - mean * s1)
           + npr2 * (sum_b2 - 2.0 * mean * sum_b
                     + float(c_dim) * mean * mean)) / total    # biased var
    inv = lax.rsqrt(var + eps)

    # ---- local_prop + GroupNorm + proj, one (C,C)x(C,Np) matmul per tap -----
    #   out_kk = wproj @ ((a*wlp[:,kk] + blp - mean)*inv*gnw + gnb)
    #          = (wproj * scale_kk_row) @ a + bias
    #   scale_kk_row[c] = wlp[c,kk]*gnw[c]*inv   (scales wproj COLUMNS)
    #   bias            = wproj @ ((blp-mean)*inv*gnw + gnb)  (same for all kk)
    wproj = wproj_ref[...]                                     # (C, C)
    scale_rows = inv * wlpg_ref[...]                           # (r2, C)
    t_row = (blp_row - mean) * (inv * gnw_row) + gnb_row       # (1, C)
    # tiny bias projection on the VPU/XLU, not a 1-lane MXU pass
    bias = jnp.sum(wproj * t_row, axis=1, keepdims=True)       # (C, 1)
    bias_b = jnp.broadcast_to(bias, (c_dim, np_dim))           # hoisted once

    for kk in range(r2):
        w_kk = wproj * scale_rows[kk:kk + 1, :]                # (C, C)
        o_ref[0, kk, :, :] = (
            jnp.dot(w_kk, a, preferred_element_type=jnp.float32) + bias_b)


# ----------------------------------- wrapper ----------------------------------
def global_sparse_attention(x, params, *, r, heads):
    B, C, H, W = x.shape
    hd = C // heads
    r2 = r * r

    # 1) sparse_sampler: AvgPool2d(kernel_size=1, stride=r) == strided pick.
    xp = x[:, :, ::r, ::r]
    Hp, Wp = xp.shape[2], xp.shape[3]
    Np = Hp * Wp

    # channels-first tokens, bf16 matmul operands (f32 accumulation in-kernel)
    xcf = xp.reshape(B, C, Np).astype(jnp.bfloat16)

    # qkv weight: original rows are [h0: q|k|v, h1: q|k|v, ...]; reorder to
    # [Q(all heads) | K(all heads) | V(all heads)] so in-kernel head slices are
    # contiguous sublane ranges.
    wqkv = jnp.transpose(params["w_qkv"].reshape(heads, 3, hd, C),
                         (1, 0, 2, 3)).reshape(3 * C, C).astype(jnp.bfloat16)

    wlp = params["w_lp"].reshape(C, r2)          # (C, 1, r, r) -> (C, r*r)
    blp = params["b_lp"].reshape(C, 1)
    gnw = params["gn_w"].reshape(C, 1)
    gnb = params["gn_b"].reshape(C, 1)
    wproj = params["w_proj"]                     # (C, C)

    # weight-only reductions precomputed at trace time (tiny)
    wsum = jnp.sum(wlp, axis=1, keepdims=True)                 # (C, 1)
    w2sum = jnp.sum(wlp * wlp, axis=1, keepdims=True)          # (C, 1)
    cstats = jnp.concatenate([wsum, w2sum, blp * wsum], axis=1)   # (C, 3)
    rvecs = jnp.concatenate([blp.T, gnw.T, gnb.T], axis=0)        # (3, C)
    wlpg = (wlp * gnw).T                                          # (r2, C)

    flops = 2 * B * (3 * C * C * Np + 2 * C * Np * Np + r2 * C * C * Np)
    transcendentals = B * heads * Np * Np
    bytes_accessed = (xcf.size * 2 + wqkv.size * 2 + cstats.size * 4
                      + rvecs.size * 4 + wlpg.size * 4 + wproj.size * 4
                      + B * r2 * C * Np * 4)

    y = pl.pallas_call(
        functools.partial(_gsa_fused_kernel, heads=heads, head_dim=hd, r2=r2),
        out_shape=jax.ShapeDtypeStruct((B, r2, C, Np), jnp.float32),
        grid=(B,),
        in_specs=[
            pl.BlockSpec((1, C, Np), lambda b: (b, 0, 0)),
            pl.BlockSpec((3 * C, C), lambda b: (0, 0)),
            pl.BlockSpec((C, 3), lambda b: (0, 0)),
            pl.BlockSpec((3, C), lambda b: (0, 0)),
            pl.BlockSpec((r2, C), lambda b: (0, 0)),
            pl.BlockSpec((C, C), lambda b: (0, 0)),
        ],
        out_specs=pl.BlockSpec((1, r2, C, Np), lambda b: (b, 0, 0, 0)),
        scratch_shapes=[pltpu.VMEM((C, Np), jnp.float32)],
        compiler_params=pltpu.CompilerParams(
            dimension_semantics=("parallel",)),
        cost_estimate=pl.CostEstimate(flops=int(flops),
                                      transcendentals=int(transcendentals),
                                      bytes_accessed=int(bytes_accessed)),
    )(xcf, wqkv, cstats, rvecs, wlpg, wproj)

    # (B, r2, C, Np) -> (B, C, H, W); tap kk = i*r + j, token n = hp*Wp + wp
    y = y.reshape(B, r, r, C, Hp, Wp)
    y = jnp.transpose(y, (0, 3, 4, 1, 5, 2))     # (B, C, Hp, i, Wp, j)
    return y.reshape(B, C, Hp * r, Wp * r)


# ------------------------------ pure-JAX reference ----------------------------
def reference(x, params, *, r, heads):
    B, C, H, W = x.shape
    hd = C // heads
    xp = x[:, :, ::r, ::r]
    Hp, Wp = xp.shape[2], xp.shape[3]
    Np = Hp * Wp
    xf = xp.reshape(B, C, Np)
    qkv = jnp.einsum("oc,bcn->bon", params["w_qkv"], xf).reshape(
        B, heads, 3 * hd, Np)
    q, k, v = qkv[:, :, :hd], qkv[:, :, hd:2 * hd], qkv[:, :, 2 * hd:]
    attn = jax.nn.softmax(jnp.einsum("bhdi,bhdj->bhij", q, k), axis=-1)
    o = jnp.einsum("bhdj,bhij->bhdi", v, attn).reshape(B, C, Hp, Wp)
    # local_prop: depthwise ConvTranspose2d, kernel=r, stride=r, bias=True
    wlp = params["w_lp"][:, 0]                                  # (C, r, r)
    y = (o[:, :, :, None, :, None] * wlp[None, :, None, :, None, :]
         + params["b_lp"][None, :, None, None, None, None])
    y = y.reshape(B, C, Hp * r, Wp * r)
    mean = jnp.mean(y, axis=(1, 2, 3), keepdims=True)
    var = jnp.mean((y - mean) ** 2, axis=(1, 2, 3), keepdims=True)
    normed = (y - mean) * lax.rsqrt(var + 1e-5)
    normed = (normed * params["gn_w"][None, :, None, None]
              + params["gn_b"][None, :, None, None])
    return jnp.einsum("oc,bchw->bohw", params["w_proj"], normed)


if __name__ == "__main__":
    B, C, H, W = 2, 16, 16, 16
    heads, r = 4, 2

    key = jax.random.PRNGKey(0)
    kx, k1, k2, k3, k4, k5, k6 = jax.random.split(key, 7)
    x = jax.random.normal(kx, (B, C, H, W), dtype=jnp.float32)
    params = {
        "w_qkv": 0.1 * jax.random.normal(k1, (3 * C, C), dtype=jnp.float32),
        "w_lp": 0.1 * jax.random.normal(k2, (C, 1, r, r), dtype=jnp.float32),
        "b_lp": 0.1 * jax.random.normal(k3, (C,), dtype=jnp.float32),
        "gn_w": 1.0 + 0.1 * jax.random.normal(k4, (C,), dtype=jnp.float32),
        "gn_b": 0.1 * jax.random.normal(k5, (C,), dtype=jnp.float32),
        "w_proj": 0.1 * jax.random.normal(k6, (C, C), dtype=jnp.float32),
    }

    fn = jax.jit(functools.partial(global_sparse_attention, r=r, heads=heads))
    ref_fn = jax.jit(functools.partial(reference, r=r, heads=heads))

    out = jax.block_until_ready(fn(x, params))
    ref = jax.block_until_ready(ref_fn(x, params))

    assert out.shape == ref.shape == (B, C, H, W), (out.shape, ref.shape)
    # Divergence vs. the f32 reference comes from: bf16 MXU operands (same
    # truncation the reference's default-precision einsums apply), the
    # approximate EUP reciprocal in the softmax (~1e-3 relative), and the
    # closed-form GroupNorm statistics (f32 rounding).  Structural bugs (head
    # slicing / tap ordering / statistics) would be orders of magnitude larger.
    max_err = float(jnp.max(jnp.abs(out - ref)))
    assert jnp.allclose(out, ref, atol=2e-2, rtol=2e-2), max_err
    print("KERNEL_OK")
</pallas_src>

<mosaic_0001>
module attributes {stable_mosaic.version = 11 : i64} {
  func.func @_gsa_fused_kernel(%arg0: i32, %arg1: memref<1x16x64xbf16, #tpu.memory_space<vmem>>, %arg2: memref<48x16xbf16, #tpu.memory_space<vmem>>, %arg3: memref<16x3xf32, #tpu.memory_space<vmem>>, %arg4: memref<3x16xf32, #tpu.memory_space<vmem>>, %arg5: memref<4x16xf32, #tpu.memory_space<vmem>>, %arg6: memref<16x16xf32, #tpu.memory_space<vmem>>, %arg7: memref<1x4x16x64xf32, #tpu.memory_space<vmem>>, %arg8: memref<16x64xf32, #tpu.memory_space<vmem>>) attributes {dimension_semantics = [#tpu.dimension_semantics<parallel>], iteration_bounds = array<i64: 2>, scalar_prefetch = 0 : i64, scratch_operands = 1 : i64, tpu.core_type = #tpu.core_type<tc>, window_params = [{transform_indices = @transform_0, window_bounds = array<i64: 1, 16, 64>}, {pipeline_mode = #tpu.pipeline_mode<synchronous>, transform_indices = @transform_1, window_bounds = array<i64: 48, 16>}, {pipeline_mode = #tpu.pipeline_mode<synchronous>, transform_indices = @transform_2, window_bounds = array<i64: 16, 3>}, {pipeline_mode = #tpu.pipeline_mode<synchronous>, transform_indices = @transform_3, window_bounds = array<i64: 3, 16>}, {pipeline_mode = #tpu.pipeline_mode<synchronous>, transform_indices = @transform_4, window_bounds = array<i64: 4, 16>}, {pipeline_mode = #tpu.pipeline_mode<synchronous>, transform_indices = @transform_5, window_bounds = array<i64: 16, 16>}, {transform_indices = @transform_6, window_bounds = array<i64: 1, 4, 16, 64>}]} {
    %c0 = arith.constant 0 : index
    %c0_0 = arith.constant 0 : index
    %c0_1 = arith.constant 0 : index
    %0 = vector.load %arg1[%c0, %c0_0, %c0_1] : memref<1x16x64xbf16, #tpu.memory_space<vmem>>, vector<1x16x64xbf16>
    %1 = vector.shape_cast %0 : vector<1x16x64xbf16> to vector<16x64xbf16>
    %c0_2 = arith.constant 0 : index
    %c0_3 = arith.constant 0 : index
    %2 = vector.load %arg2[%c0_2, %c0_3] : memref<48x16xbf16, #tpu.memory_space<vmem>>, vector<48x16xbf16>
    %cst = arith.constant dense<0.000000e+00> : vector<48x64xf32>
    %3 = tpu.matmul %2, %1, %cst {dimension_numbers = #tpu.dot_dimension_numbers<[1], [0], [0], [1], [0, 0, 1, 1], [], []>} : vector<48x16xbf16>, vector<16x64xbf16>, vector<48x64xf32> -> vector<48x64xf32>
    %4 = vector.extract_strided_slice %3 {offsets = [0, 0], sizes = [4, 64], strides = [1, 1]} : vector<48x64xf32> to vector<4x64xf32>
    %5 = vector.extract_strided_slice %3 {offsets = [16, 0], sizes = [4, 64], strides = [1, 1]} : vector<48x64xf32> to vector<4x64xf32>
    %6 = vector.extract_strided_slice %3 {offsets = [32, 0], sizes = [4, 64], strides = [1, 1]} : vector<48x64xf32> to vector<4x64xf32>
    %cst_4 = arith.constant dense<0.000000e+00> : vector<64x64xf32>
    %7 = tpu.matmul %5, %4, %cst_4 {dimension_numbers = #tpu.dot_dimension_numbers<[0], [0], [1], [1], [0, 1, 1, 1], [], []>} : vector<4x64xf32>, vector<4x64xf32>, vector<64x64xf32> -> vector<64x64xf32>
    %cst_5 = arith.constant dense<0xFF800000> : vector<64xf32>
    %8 = vector.multi_reduction <maximumf>, %7, %cst_5 [0] : vector<64x64xf32> to vector<64xf32>
    %9 = vector.shape_cast %8 : vector<64xf32> to vector<1x64xf32>
    %10 = vector.broadcast %9 : vector<1x64xf32> to vector<64x64xf32>
    %11 = arith.subf %7, %10 : vector<64x64xf32>
    %12 = math.exp %11 : vector<64x64xf32>
    %cst_6 = arith.constant dense<0.000000e+00> : vector<64xf32>
    %13 = vector.multi_reduction <add>, %12, %cst_6 [0] : vector<64x64xf32> to vector<64xf32>
    %14 = vector.shape_cast %13 : vector<64xf32> to vector<1x64xf32>
    %cst_7 = arith.constant dense<0.000000e+00> : vector<4x64xf32>
    %15 = tpu.matmul %6, %12, %cst_7 {dimension_numbers = #tpu.dot_dimension_numbers<[1], [0], [0], [1], [0, 0, 1, 1], [], []>} : vector<4x64xf32>, vector<64x64xf32>, vector<4x64xf32> -> vector<4x64xf32>
    %16 = tpu.reciprocal %14 {approx = true} : vector<1x64xf32> -> vector<1x64xf32>
    %17 = vector.broadcast %16 : vector<1x64xf32> to vector<4x64xf32>
    %18 = arith.mulf %15, %17 : vector<4x64xf32>
    %c0_8 = arith.constant 0 : index
    %c0_9 = arith.constant 0 : index
    %19 = vector.load %arg8[%c0_8, %c0_9] : memref<16x64xf32, #tpu.memory_space<vmem>>, vector<4x64xf32>
    tpu.vector_store %arg8[%c0_8, %c0_9], %18 {strides = array<i32>} : memref<16x64xf32, #tpu.memory_space<vmem>>, vector<4x64xf32>,
    %20 = vector.extract_strided_slice %3 {offsets = [4, 0], sizes = [4, 64], strides = [1, 1]} : vector<48x64xf32> to vector<4x64xf32>
    %21 = vector.extract_strided_slice %3 {offsets = [20, 0], sizes = [4, 64], strides = [1, 1]} : vector<48x64xf32> to vector<4x64xf32>
    %22 = vector.extract_strided_slice %3 {offsets = [36, 0], sizes = [4, 64], strides = [1, 1]} : vector<48x64xf32> to vector<4x64xf32>
    %cst_10 = arith.constant dense<0.000000e+00> : vector<64x64xf32>
    %23 = tpu.matmul %21, %20, %cst_10 {dimension_numbers = #tpu.dot_dimension_numbers<[0], [0], [1], [1], [0, 1, 1, 1], [], []>} : vector<4x64xf32>, vector<4x64xf32>, vector<64x64xf32> -> vector<64x64xf32>
    %cst_11 = arith.constant dense<0xFF800000> : vector<64xf32>
    %24 = vector.multi_reduction <maximumf>, %23, %cst_11 [0] : vector<64x64xf32> to vector<64xf32>
    %25 = vector.shape_cast %24 : vector<64xf32> to vector<1x64xf32>
    %26 = vector.broadcast %25 : vector<1x64xf32> to vector<64x64xf32>
    %27 = arith.subf %23, %26 : vector<64x64xf32>
    %28 = math.exp %27 : vector<64x64xf32>
    %cst_12 = arith.constant dense<0.000000e+00> : vector<64xf32>
    %29 = vector.multi_reduction <add>, %28, %cst_12 [0] : vector<64x64xf32> to vector<64xf32>
    %30 = vector.shape_cast %29 : vector<64xf32> to vector<1x64xf32>
    %cst_13 = arith.constant dense<0.000000e+00> : vector<4x64xf32>
    %31 = tpu.matmul %22, %28, %cst_13 {dimension_numbers = #tpu.dot_dimension_numbers<[1], [0], [0], [1], [0, 0, 1, 1], [], []>} : vector<4x64xf32>, vector<64x64xf32>, vector<4x64xf32> -> vector<4x64xf32>
    %32 = tpu.reciprocal %30 {approx = true} : vector<1x64xf32> -> vector<1x64xf32>
    %33 = vector.broadcast %32 : vector<1x64xf32> to vector<4x64xf32>
    %34 = arith.mulf %31, %33 : vector<4x64xf32>
    %c4 = arith.constant 4 : index
    %c0_14 = arith.constant 0 : index
    %35 = vector.load %arg8[%c4, %c0_14] : memref<16x64xf32, #tpu.memory_space<vmem>>, vector<4x64xf32>
    tpu.vector_store %arg8[%c4, %c0_14], %34 {strides = array<i32>} : memref<16x64xf32, #tpu.memory_space<vmem>>, vector<4x64xf32>,
    %36 = vector.extract_strided_slice %3 {offsets = [8, 0], sizes = [4, 64], strides = [1, 1]} : vector<48x64xf32> to vector<4x64xf32>
    %37 = vector.extract_strided_slice %3 {offsets = [24, 0], sizes = [4, 64], strides = [1, 1]} : vector<48x64xf32> to vector<4x64xf32>
    %38 = vector.extract_strided_slice %3 {offsets = [40, 0], sizes = [4, 64], strides = [1, 1]} : vector<48x64xf32> to vector<4x64xf32>
    %cst_15 = arith.constant dense<0.000000e+00> : vector<64x64xf32>
    %39 = tpu.matmul %37, %36, %cst_15 {dimension_numbers = #tpu.dot_dimension_numbers<[0], [0], [1], [1], [0, 1, 1, 1], [], []>} : vector<4x64xf32>, vector<4x64xf32>, vector<64x64xf32> -> vector<64x64xf32>
    %cst_16 = arith.constant dense<0xFF800000> : vector<64xf32>
    %40 = vector.multi_reduction <maximumf>, %39, %cst_16 [0] : vector<64x64xf32> to vector<64xf32>
    %41 = vector.shape_cast %40 : vector<64xf32> to vector<1x64xf32>
    %42 = vector.broadcast %41 : vector<1x64xf32> to vector<64x64xf32>
    %43 = arith.subf %39, %42 : vector<64x64xf32>
    %44 = math.exp %43 : vector<64x64xf32>
    %cst_17 = arith.constant dense<0.000000e+00> : vector<64xf32>
    %45 = vector.multi_reduction <add>, %44, %cst_17 [0] : vector<64x64xf32> to vector<64xf32>
    %46 = vector.shape_cast %45 : vector<64xf32> to vector<1x64xf32>
    %cst_18 = arith.constant dense<0.000000e+00> : vector<4x64xf32>
    %47 = tpu.matmul %38, %44, %cst_18 {dimension_numbers = #tpu.dot_dimension_numbers<[1], [0], [0], [1], [0, 0, 1, 1], [], []>} : vector<4x64xf32>, vector<64x64xf32>, vector<4x64xf32> -> vector<4x64xf32>
    %48 = tpu.reciprocal %46 {approx = true} : vector<1x64xf32> -> vector<1x64xf32>
    %49 = vector.broadcast %48 : vector<1x64xf32> to vector<4x64xf32>
    %50 = arith.mulf %47, %49 : vector<4x64xf32>
    %c8 = arith.constant 8 : index
    %c0_19 = arith.constant 0 : index
    %51 = vector.load %arg8[%c8, %c0_19] : memref<16x64xf32, #tpu.memory_space<vmem>>, vector<4x64xf32>
    tpu.vector_store %arg8[%c8, %c0_19], %50 {strides = array<i32>} : memref<16x64xf32, #tpu.memory_space<vmem>>, vector<4x64xf32>,
    %52 = vector.extract_strided_slice %3 {offsets = [12, 0], sizes = [4, 64], strides = [1, 1]} : vector<48x64xf32> to vector<4x64xf32>
    %53 = vector.extract_strided_slice %3 {offsets = [28, 0], sizes = [4, 64], strides = [1, 1]} : vector<48x64xf32> to vector<4x64xf32>
    %54 = vector.extract_strided_slice %3 {offsets = [44, 0], sizes = [4, 64], strides = [1, 1]} : vector<48x64xf32> to vector<4x64xf32>
    %cst_20 = arith.constant dense<0.000000e+00> : vector<64x64xf32>
    %55 = tpu.matmul %53, %52, %cst_20 {dimension_numbers = #tpu.dot_dimension_numbers<[0], [0], [1], [1], [0, 1, 1, 1], [], []>} : vector<4x64xf32>, vector<4x64xf32>, vector<64x64xf32> -> vector<64x64xf32>
    %cst_21 = arith.constant dense<0xFF800000> : vector<64xf32>
    %56 = vector.multi_reduction <maximumf>, %55, %cst_21 [0] : vector<64x64xf32> to vector<64xf32>
    %57 = vector.shape_cast %56 : vector<64xf32> to vector<1x64xf32>
    %58 = vector.broadcast %57 : vector<1x64xf32> to vector<64x64xf32>
    %59 = arith.subf %55, %58 : vector<64x64xf32>
    %60 = math.exp %59 : vector<64x64xf32>
    %cst_22 = arith.constant dense<0.000000e+00> : vector<64xf32>
    %61 = vector.multi_reduction <add>, %60, %cst_22 [0] : vector<64x64xf32> to vector<64xf32>
    %62 = vector.shape_cast %61 : vector<64xf32> to vector<1x64xf32>
    %cst_23 = arith.constant dense<0.000000e+00> : vector<4x64xf32>
    %63 = tpu.matmul %54, %60, %cst_23 {dimension_numbers = #tpu.dot_dimension_numbers<[1], [0], [0], [1], [0, 0, 1, 1], [], []>} : vector<4x64xf32>, vector<64x64xf32>, vector<4x64xf32> -> vector<4x64xf32>
    %64 = tpu.reciprocal %62 {approx = true} : vector<1x64xf32> -> vector<1x64xf32>
    %65 = vector.broadcast %64 : vector<1x64xf32> to vector<4x64xf32>
    %66 = arith.mulf %63, %65 : vector<4x64xf32>
    %c12 = arith.constant 12 : index
    %c0_24 = arith.constant 0 : index
    %67 = vector.load %arg8[%c12, %c0_24] : memref<16x64xf32, #tpu.memory_space<vmem>>, vector<4x64xf32>
    tpu.vector_store %arg8[%c12, %c0_24], %66 {strides = array<i32>} : memref<16x64xf32, #tpu.memory_space<vmem>>, vector<4x64xf32>,
    %c0_25 = arith.constant 0 : index
    %c0_26 = arith.constant 0 : index
    %68 = vector.load %arg8[%c0_25, %c0_26] : memref<16x64xf32, #tpu.memory_space<vmem>>, vector<16x64xf32>
    %c0_27 = arith.constant 0 : index
    %c0_28 = arith.constant 0 : index
    %69 = vector.load %arg3[%c0_27, %c0_28] : memref<16x3xf32, #tpu.memory_space<vmem>>, vector<16x1xf32>
    %c0_29 = arith.constant 0 : index
    %c1 = arith.constant 1 : index
    %70 = vector.load %arg3[%c0_29, %c1] : memref<16x3xf32, #tpu.memory_space<vmem>>, vector<16x1xf32>
    %c0_30 = arith.constant 0 : index
    %c2 = arith.constant 2 : index
    %71 = vector.load %arg3[%c0_30, %c2] : memref<16x3xf32, #tpu.memory_space<vmem>>, vector<16x1xf32>
    %c0_31 = arith.constant 0 : index
    %c0_32 = arith.constant 0 : index
    %72 = vector.load %arg4[%c0_31, %c0_32] : memref<3x16xf32, #tpu.memory_space<vmem>>, vector<1x16xf32>
    %c1_33 = arith.constant 1 : index
    %c0_34 = arith.constant 0 : index
    %73 = vector.load %arg4[%c1_33, %c0_34] : memref<3x16xf32, #tpu.memory_space<vmem>>, vector<1x16xf32>
    %c2_35 = arith.constant 2 : index
    %c0_36 = arith.constant 0 : index
    %74 = vector.load %arg4[%c2_35, %c0_36] : memref<3x16xf32, #tpu.memory_space<vmem>>, vector<1x16xf32>
    %cst_37 = arith.constant dense<0.000000e+00> : vector<16xf32>
    %75 = vector.multi_reduction <add>, %68, %cst_37 [1] : vector<16x64xf32> to vector<16xf32>
    %76 = vector.shape_cast %75 : vector<16xf32> to vector<16x1xf32>
    %77 = arith.mulf %68, %68 : vector<16x64xf32>
    %cst_38 = arith.constant dense<0.000000e+00> : vector<16xf32>
    %78 = vector.multi_reduction <add>, %77, %cst_38 [1] : vector<16x64xf32> to vector<16xf32>
    %79 = vector.shape_cast %78 : vector<16xf32> to vector<16x1xf32>
    %80 = arith.mulf %69, %76 : vector<16x1xf32>
    %81 = vector.shape_cast %80 : vector<16x1xf32> to vector<1x16x1xf32>
    %cst_39 = arith.constant dense<0.000000e+00> : vector<1xf32>
    %82 = vector.multi_reduction <add>, %81, %cst_39 [1, 2] : vector<1x16x1xf32> to vector<1xf32>
    %83 = vector.shape_cast %82 : vector<1xf32> to vector<1x1x1xf32>
    %84 = vector.extract %83[0, 0, 0] : f32 from vector<1x1x1xf32>
    %85 = arith.mulf %70, %79 : vector<16x1xf32>
    %86 = vector.shape_cast %85 : vector<16x1xf32> to vector<1x16x1xf32>
    %cst_40 = arith.constant dense<0.000000e+00> : vector<1xf32>
    %87 = vector.multi_reduction <add>, %86, %cst_40 [1, 2] : vector<1x16x1xf32> to vector<1xf32>
    %88 = vector.shape_cast %87 : vector<1xf32> to vector<1x1x1xf32>
    %89 = vector.extract %88[0, 0, 0] : f32 from vector<1x1x1xf32>
    %90 = arith.mulf %71, %76 : vector<16x1xf32>
    %91 = vector.shape_cast %90 : vector<16x1xf32> to vector<1x16x1xf32>
    %cst_41 = arith.constant dense<0.000000e+00> : vector<1xf32>
    %92 = vector.multi_reduction <add>, %91, %cst_41 [1, 2] : vector<1x16x1xf32> to vector<1xf32>
    %93 = vector.shape_cast %92 : vector<1xf32> to vector<1x1x1xf32>
    %94 = vector.extract %93[0, 0, 0] : f32 from vector<1x1x1xf32>
    %95 = vector.shape_cast %72 : vector<1x16xf32> to vector<1x1x16xf32>
    %cst_42 = arith.constant dense<0.000000e+00> : vector<1xf32>
    %96 = vector.multi_reduction <add>, %95, %cst_42 [1, 2] : vector<1x1x16xf32> to vector<1xf32>
    %97 = vector.shape_cast %96 : vector<1xf32> to vector<1x1x1xf32>
    %98 = vector.extract %97[0, 0, 0] : f32 from vector<1x1x1xf32>
    %99 = arith.mulf %72, %72 : vector<1x16xf32>
    %100 = vector.shape_cast %99 : vector<1x16xf32> to vector<1x1x16xf32>
    %cst_43 = arith.constant dense<0.000000e+00> : vector<1xf32>
    %101 = vector.multi_reduction <add>, %100, %cst_43 [1, 2] : vector<1x1x16xf32> to vector<1xf32>
    %102 = vector.shape_cast %101 : vector<1xf32> to vector<1x1x1xf32>
    %103 = vector.extract %102[0, 0, 0] : f32 from vector<1x1x1xf32>
    %cst_44 = arith.constant 2.560000e+02 : f32
    %104 = arith.mulf %cst_44, %98 : f32
    %105 = arith.addf %84, %104 : f32
    %cst_45 = arith.constant 4.096000e+03 : f32
    %106 = arith.divf %105, %cst_45 : f32
    %107 = arith.mulf %106, %84 : f32
    %108 = arith.subf %94, %107 : f32
    %cst_46 = arith.constant 2.000000e+00 : f32
    %109 = arith.mulf %cst_46, %108 : f32
    %110 = arith.addf %89, %109 : f32
    %cst_47 = arith.constant 2.000000e+00 : f32
    %111 = arith.mulf %cst_47, %106 : f32
    %112 = arith.mulf %111, %98 : f32
    %113 = arith.subf %103, %112 : f32
    %cst_48 = arith.constant 1.600000e+01 : f32
    %114 = arith.mulf %cst_48, %106 : f32
    %115 = arith.mulf %114, %106 : f32
    %116 = arith.addf %113, %115 : f32
    %cst_49 = arith.constant 2.560000e+02 : f32
    %117 = arith.mulf %cst_49, %116 : f32
    %118 = arith.addf %110, %117 : f32
    %cst_50 = arith.constant 4.096000e+03 : f32
    %119 = arith.divf %118, %cst_50 : f32
    %cst_51 = arith.constant 9.99999974E-6 : f32
    %120 = arith.addf %119, %cst_51 : f32
    %121 = math.rsqrt %120 : f32
    %c0_52 = arith.constant 0 : index
    %c0_53 = arith.constant 0 : index
    %122 = vector.load %arg6[%c0_52, %c0_53] : memref<16x16xf32, #tpu.memory_space<vmem>>, vector<16x16xf32>
    %c0_54 = arith.constant 0 : index
    %c0_55 = arith.constant 0 : index
    %123 = vector.load %arg5[%c0_54, %c0_55] : memref<4x16xf32, #tpu.memory_space<vmem>>, vector<4x16xf32>
    %124 = vector.broadcast %121 : f32 to vector<4x16xf32>
    %125 = arith.mulf %124, %123 : vector<4x16xf32>
    %126 = vector.broadcast %106 : f32 to vector<1x16xf32>
    %127 = arith.subf %72, %126 : vector<1x16xf32>
    %128 = vector.broadcast %121 : f32 to vector<1x16xf32>
    %129 = arith.mulf %128, %73 : vector<1x16xf32>
    %130 = arith.mulf %127, %129 : vector<1x16xf32>
    %131 = arith.addf %130, %74 : vector<1x16xf32>
    %132 = vector.broadcast %131 : vector<1x16xf32> to vector<16x16xf32>
    %133 = arith.mulf %122, %132 : vector<16x16xf32>
    %cst_56 = arith.constant dense<0.000000e+00> : vector<16xf32>
    %134 = vector.multi_reduction <add>, %133, %cst_56 [1] : vector<16x16xf32> to vector<16xf32>
    %135 = vector.shape_cast %134 : vector<16xf32> to vector<16x1xf32>
    %136 = vector.shape_cast %135 : vector<16x1xf32> to vector<16x1xf32>
    %137 = vector.broadcast %136 : vector<16x1xf32> to vector<16x64xf32>
    %138 = vector.extract_strided_slice %125 {offsets = [0, 0], sizes = [1, 16], strides = [1, 1]} : vector<4x16xf32> to vector<1x16xf32>
    %139 = vector.broadcast %138 : vector<1x16xf32> to vector<16x16xf32>
    %140 = arith.mulf %122, %139 : vector<16x16xf32>
    %cst_57 = arith.constant dense<0.000000e+00> : vector<16x64xf32>
    %141 = tpu.matmul %140, %68, %cst_57 {dimension_numbers = #tpu.dot_dimension_numbers<[1], [0], [0], [1], [0, 0, 1, 1], [], []>} : vector<16x16xf32>, vector<16x64xf32>, vector<16x64xf32> -> vector<16x64xf32>
    %142 = arith.addf %141, %137 : vector<16x64xf32>
    %c0_58 = arith.constant 0 : index
    %c0_59 = arith.constant 0 : index
    %c0_60 = arith.constant 0 : index
    %c0_61 = arith.constant 0 : index
    %143 = vector.load %arg7[%c0_58, %c0_59, %c0_60, %c0_61] : memref<1x4x16x64xf32, #tpu.memory_space<vmem>>, vector<1x1x16x64xf32>
    %144 = vector.shape_cast %143 : vector<1x1x16x64xf32> to vector<16x64xf32>
    %145 = vector.shape_cast %142 : vector<16x64xf32> to vector<1x1x16x64xf32>
    tpu.vector_store %arg7[%c0_58, %c0_59, %c0_60, %c0_61], %145 {strides = array<i32>} : memref<1x4x16x64xf32, #tpu.memory_space<vmem>>, vector<1x1x16x64xf32>,
    %146 = vector.extract_strided_slice %125 {offsets = [1, 0], sizes = [1, 16], strides = [1, 1]} : vector<4x16xf32> to vector<1x16xf32>
    %147 = vector.broadcast %146 : vector<1x16xf32> to vector<16x16xf32>
    %148 = arith.mulf %122, %147 : vector<16x16xf32>
    %cst_62 = arith.constant dense<0.000000e+00> : vector<16x64xf32>
    %149 = tpu.matmul %148, %68, %cst_62 {dimension_numbers = #tpu.dot_dimension_numbers<[1], [0], [0], [1], [0, 0, 1, 1], [], []>} : vector<16x16xf32>, vector<16x64xf32>, vector<16x64xf32> -> vector<16x64xf32>
    %150 = arith.addf %149, %137 : vector<16x64xf32>
    %c0_63 = arith.constant 0 : index
    %c1_64 = arith.constant 1 : index
    %c0_65 = arith.constant 0 : index
    %c0_66 = arith.constant 0 : index
    %151 = vector.load %arg7[%c0_63, %c1_64, %c0_65, %c0_66] : memref<1x4x16x64xf32, #tpu.memory_space<vmem>>, vector<1x1x16x64xf32>
    %152 = vector.shape_cast %151 : vector<1x1x16x64xf32> to vector<16x64xf32>
    %153 = vector.shape_cast %150 : vector<16x64xf32> to vector<1x1x16x64xf32>
    tpu.vector_store %arg7[%c0_63, %c1_64, %c0_65, %c0_66], %153 {strides = array<i32>} : memref<1x4x16x64xf32, #tpu.memory_space<vmem>>, vector<1x1x16x64xf32>,
    %154 = vector.extract_strided_slice %125 {offsets = [2, 0], sizes = [1, 16], strides = [1, 1]} : vector<4x16xf32> to vector<1x16xf32>
    %155 = vector.broadcast %154 : vector<1x16xf32> to vector<16x16xf32>
    %156 = arith.mulf %122, %155 : vector<16x16xf32>
    %cst_67 = arith.constant dense<0.000000e+00> : vector<16x64xf32>
    %157 = tpu.matmul %156, %68, %cst_67 {dimension_numbers = #tpu.dot_dimension_numbers<[1], [0], [0], [1], [0, 0, 1, 1], [], []>} : vector<16x16xf32>, vector<16x64xf32>, vector<16x64xf32> -> vector<16x64xf32>
    %158 = arith.addf %157, %137 : vector<16x64xf32>
    %c0_68 = arith.constant 0 : index
    %c2_69 = arith.constant 2 : index
    %c0_70 = arith.constant 0 : index
    %c0_71 = arith.constant 0 : index
    %159 = vector.load %arg7[%c0_68, %c2_69, %c0_70, %c0_71] : memref<1x4x16x64xf32, #tpu.memory_space<vmem>>, vector<1x1x16x64xf32>
    %160 = vector.shape_cast %159 : vector<1x1x16x64xf32> to vector<16x64xf32>
    %161 = vector.shape_cast %158 : vector<16x64xf32> to vector<1x1x16x64xf32>
    tpu.vector_store %arg7[%c0_68, %c2_69, %c0_70, %c0_71], %161 {strides = array<i32>} : memref<1x4x16x64xf32, #tpu.memory_space<vmem>>, vector<1x1x16x64xf32>,
    %162 = vector.extract_strided_slice %125 {offsets = [3, 0], sizes = [1, 16], strides = [1, 1]} : vector<4x16xf32> to vector<1x16xf32>
    %163 = vector.broadcast %162 : vector<1x16xf32> to vector<16x16xf32>
    %164 = arith.mulf %122, %163 : vector<16x16xf32>
    %cst_72 = arith.constant dense<0.000000e+00> : vector<16x64xf32>
    %165 = tpu.matmul %164, %68, %cst_72 {dimension_numbers = #tpu.dot_dimension_numbers<[1], [0], [0], [1], [0, 0, 1, 1], [], []>} : vector<16x16xf32>, vector<16x64xf32>, vector<16x64xf32> -> vector<16x64xf32>
    %166 = arith.addf %165, %137 : vector<16x64xf32>
    %c0_73 = arith.constant 0 : index
    %c3 = arith.constant 3 : index
    %c0_74 = arith.constant 0 : index
    %c0_75 = arith.constant 0 : index
    %167 = vector.load %arg7[%c0_73, %c3, %c0_74, %c0_75] : memref<1x4x16x64xf32, #tpu.memory_space<vmem>>, vector<1x1x16x64xf32>
    %168 = vector.shape_cast %167 : vector<1x1x16x64xf32> to vector<16x64xf32>
    %169 = vector.shape_cast %166 : vector<16x64xf32> to vector<1x1x16x64xf32>
    tpu.vector_store %arg7[%c0_73, %c3, %c0_74, %c0_75], %169 {strides = array<i32>} : memref<1x4x16x64xf32, #tpu.memory_space<vmem>>, vector<1x1x16x64xf32>,
    return
  }
  func.func @transform_0(%arg0: i32) -> (i32, i32, i32) {
    %c0_i32 = arith.constant 0 : i32
    %c0_i32_0 = arith.constant 0 : i32
    %c0_i32_1 = arith.constant 0 : i32
    return %arg0, %c0_i32, %c0_i32_0 : i32, i32, i32
  }
  func.func @transform_1(%arg0: i32) -> (i32, i32) {
    %c0_i32 = arith.constant 0 : i32
    %c0_i32_0 = arith.constant 0 : i32
    %c0_i32_1 = arith.constant 0 : i32
    return %c0_i32, %c0_i32_0 : i32, i32
  }
  func.func @transform_2(%arg0: i32) -> (i32, i32) {
    %c0_i32 = arith.constant 0 : i32
    %c0_i32_0 = arith.constant 0 : i32
    %c0_i32_1 = arith.constant 0 : i32
    return %c0_i32, %c0_i32_0 : i32, i32
  }
  func.func @transform_3(%arg0: i32) -> (i32, i32) {
    %c0_i32 = arith.constant 0 : i32
    %c0_i32_0 = arith.constant 0 : i32
    %c0_i32_1 = arith.constant 0 : i32
    return %c0_i32, %c0_i32_0 : i32, i32
  }
  func.func @transform_4(%arg0: i32) -> (i32, i32) {
    %c0_i32 = arith.constant 0 : i32
    %c0_i32_0 = arith.constant 0 : i32
    %c0_i32_1 = arith.constant 0 : i32
    return %c0_i32, %c0_i32_0 : i32, i32
  }
  func.func @transform_5(%arg0: i32) -> (i32, i32) {
    %c0_i32 = arith.constant 0 : i32
    %c0_i32_0 = arith.constant 0 : i32
    %c0_i32_1 = arith.constant 0 : i32
    return %c0_i32, %c0_i32_0 : i32, i32
  }
  func.func @transform_6(%arg0: i32) -> (i32, i32, i32, i32) {
    %c0_i32 = arith.constant 0 : i32
    %c0_i32_0 = arith.constant 0 : i32
    %c0_i32_1 = arith.constant 0 : i32
    %c0_i32_2 = arith.constant 0 : i32
    return %arg0, %c0_i32, %c0_i32_0, %c0_i32_1 : i32, i32, i32, i32
  }
}

</mosaic_0001>

<bundles_post_ra>
// kernel: global_sparse_attention.1
= control target key start
LH: loop header
LB: loop body
LE: loop exit
PB: predicated region body
PF: predicated region fallthrough
CT: control target
= control target key end

     0   :  { %s2632_s21 = smov 0   ;;  %s2941_s0 = inlined_call_operand.vmem [shape: bf16[2,16,64], index: 0, kind: input, shape index: {}]   ;;  %s2942_s1 = inlined_call_operand.vmem [shape: bf16[48,16], index: 1, kind: input, shape index: {}]   ;;  %s2943_s2 = inlined_call_operand.vmem [shape: f32[16,3], index: 2, kind: input, shape index: {}]   ;;  %s2944_s3 = inlined_call_operand.vmem [shape: f32[3,16], index: 3, kind: input, shape index: {}]   ;;  %s2945_s4 = inlined_call_operand.vmem [shape: f32[4,16], index: 4, kind: input, shape index: {}]   ;;  %s2946_s5 = inlined_call_operand.vmem [shape: f32[16,16], index: 5, kind: input, shape index: {}]   ;;  %s2947_s6 = inlined_call_operand.vmem [shape: f32[2,4,16,64], index: 6, kind: output, shape index: {}]  }
   0x1 LB: > { %s2143_s22 = sadd.s32 4294967295, %s2591_s21   ;;  %p2147_p0 = scmp.ge.s32.totalorder %s2591_s21, 1  ;;  %s2591_s21 = sphi %s2632_s21, %s16_s21  }
   0x2   : > { %p212_p1 = scmp.lt.s32.totalorder %s2591_s21, 3 }
   0x4   : > { %p213_p2 = pnand %p2147_p0, %p212_p1 }
   0x5   : > { %p242_p3 = scmp.lt.s32.totalorder (!%p213_p2), %s2143_s22, 1  ;;  %s2595_s11 = smov (!%p213_p2), 127  }
   0x6   : > { %216 = sbr.rel (%p213_p2) target bundleno = 2408 (0x968), region = 44  ;;  %s2596_s14 = smov (!%p213_p2), 126  }
   0xb   : > { %v2593_v0 = vmov 0.0   ;;  %vm2594_vm0 = vmmov 0   ;;  %s2949_s22 = smov (!%p242_p3, %s2143_s22), 1  ;;  %v2508_v2 = vld [vmem:[%s2942_s1] sm:$0xff]   ;;  %vm282_vm1 = vcmask 130048   ;;  %v2509_v3 = vld [vmem:[%s2942_s1 + $0x8] sm:$0xff]  }
   0xc   : > { %2309 = vmatprep.subr.bf16.mxu0 %v2593_v0  ;;  %2311 = vmatprep.mubr.msk.bf16.mxu0 %vm2594_vm0, %v2593_v0  ;;  %s2215_s23 = sshll.u32 %s2949_s22, 3  ;;  %vm406_vm2 = vcmask 1043456   ;;  %v2510_v12 = vld [vmem:[%s2942_s1 + $0x10] sm:$0xff]   ;;  %vm381_vm3 = vcmask 31744   ;;  %vm515_vm4 = vcmask 523264   ;;  %vm657_vm5 = vcmask 519168  }
   0xd   : > { %s246_s26 = scalar_lea.vmem %s2941_s0, %s2215_s23  ;;  %vm1606_vm6 = vcmask 7168   ;;  %vm1661_vm7 = vcmask 122880  }
   0xe   : > { %v2507_v1 = vld [vmem:[%s246_s26] sm:$0xff]  }
   0xf   : > { %2310 = vmatpush3.bf16.msra.mxu0 %v2507_v1 }
  0x10   : > { %2370 = vmatprep.subr.mxu0 %v2593_v0 }
  0x12   : > { %2312 = vmatmul.mubr.msk.bf16.vlgmr.msra.gmra.mxu0 %vm282_vm1, %v2508_v2 }
  0x13   : > { %2315 = vmatprep.mubr.msk.bf16.mxu0 %vm2594_vm0, %v2593_v0 }
  0x1a   : > { %2316 = vmatmul.mubr.msk.bf16.gmra.mxu0 %vm282_vm1, %v2509_v3 }
  0x1b   : > { %2319 = vmatprep.mubr.msk.bf16.mxu0 %vm2594_vm0, %v2593_v0 }
  0x22   : > { %2320 = vmatmul.mubr.msk.bf16.gmra.mxu0 %vm282_vm1, %v2510_v12 }
  0x23   : > { %2386 = vmatprep.mubr.msk.f32.mxu0 %vm2594_vm0, %v2593_v0 }
  0xd2   : > { %v2662_v4 = vpop.f32.mrf.mxu0 }
  0xd3   : > { %2323 = vmatprep.subr.msk.mxu1 %vm406_vm2, %v2662_v4 }
  0xd4   : > { %v2313_v5 = vpop.f32.mrf.mxu0  ;;  %2324 = vmatpush3.msk.msra.mxu1 %vm406_vm2, %v2662_v4 }
  0xd5   : > { %2337 = vmatprep.subr.mxu1 %v2593_v0 }
  0xd6   : > { %v2669_v6 = vpop.f32.mrf.mxu0 }
  0xd8   : > { %v2314_v7 = vpop.f32.mrf.mxu0 }
  0xda   : > { %v334_v8 = vpop.f32.mrf.mxu0 }
  0xdb   : > { %349 = vxpose.xlu0.b32.start.end [1/1] (short) (narrow) %v334_v8, 64  ;;  %v660_v13 = vrot.slane %v334_v8, 4 }
  0xdc   : > { %v2317_v9 = vpop.f32.mrf.mxu0 }
  0xde   : > { %v337_v10 = vpop.f32.mrf.mxu0 }
  0xdf   : > { %968 = vxpose.xlu1.b32.start.end [1/1] (short) (narrow) %v337_v10, 64  ;;  %v1275_v14 = vrot.slane %v337_v10, 4 }
  0xe0   : > { %v2318_v11 = vpop.f32.mrf.mxu0 }
  0xe2   : > { %v2687_v23 = vpop.f32.mrf.mxu0 }
  0xe4   : > { %v2321_v24 = vpop.f32.mrf.mxu0 }
  0xe6   : > { %v2689_v25 = vpop.f32.mrf.mxu0 }
  0xe8   : > { %v2322_v26 = vpop.f32.mrf.mxu0 }
  0xf8   : > { %662 = vxpose.xlu0.b32.start.end [1/1] (short) (narrow) %v660_v13, 64 }
  0xfc   : > { %1277 = vxpose.xlu1.b32.start.end [1/1] (short) (narrow) %v1275_v14, 64 }
 0x157   : > { %v365_v15 = vpop.trf.xlu0 }
 0x158   : > { %2325 = vmatprep.mubr.msk.f32.mxu1 %vm381_vm3, %v365_v15 }
 0x15b   : > { %v366_v16 = vpop.trf.xlu0 }
 0x15c   : > { %2326 = vmatmul.mubr.msk.f32.vlgmr.msra.gmra.mxu1 %vm381_vm3, %v366_v16 }
 0x15f   : > { %v367_v17 = vpop.trf.xlu0 }
 0x160   : > { %2328 = vmatprep.mubr.msk.f32.mxu1 %vm381_vm3, %v367_v17 }
 0x163   : > { %v368_v18 = vpop.trf.xlu0 }
 0x164   : > { %2329 = vmatmul.mubr.msk.f32.gmra.mxu1 %vm381_vm3, %v368_v18 }
 0x167   : > { %v369_v19 = vpop.trf.xlu0 }
 0x168   : > { %2331 = vmatprep.mubr.msk.f32.mxu1 %vm381_vm3, %v369_v19 }
 0x16b   : > { %v370_v20 = vpop.trf.xlu0 }
 0x16c   : > { %2332 = vmatmul.mubr.msk.f32.gmra.mxu1 %vm381_vm3, %v370_v20 }
 0x16f   : > { %v371_v21 = vpop.trf.xlu0 }
 0x170   : > { %2334 = vmatprep.mubr.msk.f32.mxu1 %vm381_vm3, %v371_v21 }
 0x173   : > { %v372_v22 = vpop.trf.xlu0 }
 0x174   : > { %2335 = vmatmul.mubr.msk.f32.gmra.mxu1 %vm381_vm3, %v372_v22 }
 0x175   : > { %2353 = vmatprep.mubr.msk.f32.mxu1 %vm2594_vm0, %v2593_v0 }
 0x177   : > { %v678_v11 = vpop.trf.xlu0 }
 0x17b   : > { %v679_v13 = vpop.trf.xlu0 }
 0x21c   : > { %v2327_v27 = vpop.f32.mrf.mxu1 }
 0x21d   : > { %v517_v40 = vsel %vm515_vm4, %v2327_v27, -inf }
 0x21e   : > { %v476_v28 = vpop.f32.mrf.mxu1 }
 0x21f   : > { %v516_v35 = vsel %vm515_vm4, %v476_v28, -inf }
 0x224   : > { %v2330_v29 = vpop.f32.mrf.mxu1 }
 0x225   : > { %v519_v41 = vsel %vm515_vm4, %v2330_v29, -inf }
 0x226   : > { %v486_v30 = vpop.f32.mrf.mxu1 }
 0x227   : > { %v518_v42 = vsel %vm515_vm4, %v486_v30, -inf }
 0x22c   : > { %v2333_v31 = vpop.f32.mrf.mxu1 }
 0x22d   : > { %v522_v36 = vsel %vm515_vm4, %v2333_v31, -inf }
 0x22e   : > { %v496_v32 = vpop.f32.mrf.mxu1  ;;  %v523_v44 = vmax.f32 %v517_v40, %v522_v36 }
 0x22f   : > { %v520_v33 = vsel %vm515_vm4, %v496_v32, -inf }
 0x230   : > { %v521_v38 = vmax.f32 %v516_v35, %v520_v33 }
 0x232   : > { %v528_v47 = vmax.f32 %v521_v38, %v523_v44 }
 0x234   : > { %v2336_v34 = vpop.f32.mrf.mxu1 }
 0x235   : > { %v526_v37 = vsel %vm515_vm4, %v2336_v34, -inf }
 0x236   : > { %v506_v39 = vpop.f32.mrf.mxu1  ;;  %v527_v45 = vmax.f32 %v519_v41, %v526_v37  ;;  %v694_v41 = vrot.slane %v2662_v4, 4 }
 0x237   : > { %v524_v43 = vsel %vm515_vm4, %v506_v39, -inf }
 0x238   : > { %v525_v46 = vmax.f32 %v518_v42, %v524_v43 }
 0x23a   : > { %v529_v48 = vmax.f32 %v525_v46, %v527_v45 }
 0x23c   : > { %v530_v49 = vmax.f32 %v528_v47, %v529_v48 }
 0x23e   : > { %v531_v50 = vrot.slane %v530_v49, 4 }
 0x240   : > { %v532_v51 = vmax.f32 %v530_v49, %v531_v50 }
 0x242   : > { %v533_v52 = vrot.slane %v532_v51, 2 }
 0x244   : > { %v534_v53 = vmax.f32 %v532_v51, %v533_v52 }
 0x246   : > { %v535_v54 = vrot.slane %v534_v53, 1 }
 0x248   : > { %v536_v55 = vmax.f32 %v534_v53, %v535_v54 }
 0x24a   : > { %v537_v56 = vsub.f32 %v476_v28, %v536_v55  ;;  %v538_v57 = vsub.f32 %v2327_v27, %v536_v55  ;;  %v539_v58 = vsub.f32 %v486_v30, %v536_v55  ;;  %v540_v59 = vsub.f32 %v2330_v29, %v536_v55  ;;  %v680_v27 = vpop.trf.xlu0 }
 0x24b   : > { %v541_v60 = vsub.f32 %v496_v32, %v536_v55  ;;  %v542_v61 = vsub.f32 %v2333_v31, %v536_v55  ;;  %v544_v2 = vsub.f32 %v2336_v34, %v536_v55  ;;  %v543_v5 = vsub.f32 %v506_v39, %v536_v55 }
 0x24c   : > { %v545_v62 = vmul.f32 1.442695, %v537_v56  ;;  %v547_v63 = vmul.f32 1.442695, %v538_v57  ;;  %v549_v1 = vmul.f32 1.442695, %v539_v58 }
 0x24d   : > { %v551_v3 = vmul.f32 1.442695, %v540_v59  ;;  %v553_v7 = vmul.f32 1.442695, %v541_v60  ;;  %v555_v8 = vmul.f32 1.442695, %v542_v61 }
 0x24e   : > { %2511 = vpow2.f32 %v545_v62  ;;  %v559_v9 = vmul.f32 1.442695, %v544_v2  ;;  %v557_v10 = vmul.f32 1.442695, %v543_v5  ;;  %v681_v36 = vpop.trf.xlu0 }
 0x24f   : > { %2513 = vpow2.f32 %v547_v63 }
 0x250   : > { %2515 = vpow2.f32 %v549_v1 }
 0x251   : > { %2517 = vpow2.f32 %v551_v3 }
 0x252   : > { %2519 = vpow2.f32 %v553_v7  ;;  %v682_v40 = vpop.trf.xlu0 }
 0x253   : > { %2521 = vpow2.f32 %v555_v8 }
 0x254   : > { %2523 = vpow2.f32 %v559_v9 }
 0x255   : > { %2525 = vpow2.f32 %v557_v10 }
 0x256   : > { %v683_v42 = vpop.trf.xlu0 }
 0x25a   : > { %v684_v4 = vpop.trf.xlu0 }
 0x25b   : > { %v2512_v12 = vpop.eup %2511 }
 0x25c   : > { %v2514_v14 = vpop.eup %2513  ;;  %v561_v15 = vsel %vm515_vm4, %v2512_v12, 0.0 }
 0x25d   : > { %v2516_v16 = vpop.eup %2515  ;;  %v562_v17 = vsel %vm515_vm4, %v2514_v14, 0.0 }
 0x25e   : > { %v2518_v18 = vpop.eup %2517  ;;  %v563_v19 = vadd.f32 %v562_v17, %v561_v15  ;;  %v564_v20 = vsel %vm515_vm4, %v2516_v16, 0.0  ;;  %v685_v43 = vpop.trf.xlu0 }
 0x25f   : > { %v2520_v21 = vpop.eup %2519  ;;  %v566_v26 = vsel %vm515_vm4, %v2518_v18, 0.0 }
 0x260   : > { %v565_v22 = vadd.f32 %v564_v20, %v563_v19  ;;  %v2522_v24 = vpop.eup %2521  ;;  %v568_v30 = vsel %vm515_vm4, %v2520_v21, 0.0 }
 0x261   : > { %v2524_v28 = vpop.eup %2523  ;;  %v570_v33 = vsel %vm515_vm4, %v2522_v24, 0.0 }
 0x262   : > { %v567_v29 = vadd.f32 %v566_v26, %v565_v22  ;;  %2338 = vmatpush3.msra.mxu1 %v2524_v28  ;;  %v2526_v31 = vpop.eup %2525  ;;  %v574_v38 = vsel %vm515_vm4, %v2524_v28, 0.0 }
 0x263   : > { %2339 = vmatprep.subr.mxu1 %v2593_v0  ;;  %v572_v35 = vsel %vm515_vm4, %v2526_v31, 0.0 }
 0x264   : > { %v569_v32 = vadd.f32 %v568_v30, %v567_v29  ;;  %2340 = vmatpush3.msra.mxu1 %v2526_v31 }
 0x265   : > { %2341 = vmatprep.subr.mxu1 %v2593_v0 }
 0x266   : > { %v571_v34 = vadd.f32 %v570_v33, %v569_v32  ;;  %2342 = vmatpush3.msra.mxu1 %v2522_v24 }
 0x267   : > { %2343 = vmatprep.subr.mxu1 %v2593_v0 }
 0x268   : > { %v573_v37 = vadd.f32 %v572_v35, %v571_v34  ;;  %2344 = vmatpush3.msra.mxu1 %v2520_v21 }
 0x269   : > { %2345 = vmatprep.subr.mxu1 %v2593_v0 }
 0x26a   : > { %v575_v39 = vadd.f32 %v574_v38, %v573_v37  ;;  %2346 = vmatpush3.msra.mxu1 %v2518_v18 }
 0x26b   : > { %2347 = vmatprep.subr.mxu1 %v2593_v0 }
 0x26c   : > { %2348 = vmatpush3.msra.mxu1 %v2516_v16  ;;  %v576_v44 = vrot.slane %v575_v39, 4 }
 0x26d   : > { %2349 = vmatprep.subr.mxu1 %v2593_v0 }
 0x26e   : > { %2350 = vmatpush3.msra.mxu1 %v2514_v14  ;;  %v577_v45 = vadd.f32 %v576_v44, %v575_v39 }
 0x26f   : > { %2351 = vmatprep.subr.mxu1 %v2593_v0 }
 0x270   : > { %2352 = vmatpush3.msra.mxu1 %v2512_v12  ;;  %v578_v46 = vrot.slane %v577_v45, 2 }
 0x271   : > { %2354 = vmatmul.mubr.msk.f32.vlgmr.msra.gmra.mxu1 %vm515_vm4, %v2687_v23  ;;  %2356 = vmatprep.subr.msk.mxu1 %vm406_vm2, %v694_v41 }
 0x272   : > { %2357 = vmatpush3.msk.msra.mxu1 %vm406_vm2, %v694_v41  ;;  %2358 = vmatprep.mubr.msk.f32.mxu1 %vm381_vm3, %v678_v11  ;;  %v579_v47 = vadd.f32 %v578_v46, %v577_v45 }
 0x273   : > { %2403 = vmatprep.subr.mxu1 %v2593_v0 }
 0x274   : > { %v580_v48 = vrot.slane %v579_v47, 1 }
 0x275   : > { %2359 = vmatmul.mubr.msk.f32.vlgmr.msra.gmra.mxu1 %vm381_vm3, %v679_v13 }
 0x276   : > { %2361 = vmatprep.mubr.msk.f32.mxu1 %vm381_vm3, %v680_v27  ;;  %v581_v49 = vadd.f32 %v580_v48, %v579_v47 }
 0x278   : > { %2527 = vrcp.f32 %v581_v49 }
 0x279   : > { %2362 = vmatmul.mubr.msk.f32.gmra.mxu1 %vm381_vm3, %v681_v36 }
 0x27a   : > { %2364 = vmatprep.mubr.msk.f32.mxu1 %vm381_vm3, %v682_v40  ;;  %v984_v40 = vpop.trf.xlu1 }
 0x27d   : > { %2365 = vmatmul.mubr.msk.f32.gmra.mxu1 %vm381_vm3, %v683_v42 }
 0x27e   : > { %2367 = vmatprep.mubr.msk.f32.mxu1 %vm381_vm3, %v684_v4  ;;  %v985_v42 = vpop.trf.xlu1 }
 0x281   : > { %2368 = vmatmul.mubr.msk.f32.gmra.mxu1 %vm381_vm3, %v685_v43 }
 0x282   : > { %2419 = vmatprep.mubr.msk.f32.mxu1 %vm2594_vm0, %v2593_v0 }
 0x285   : > { %v2528_v50 = vpop.eup %2527 }
 0x331   : > { %v651_v51 = vpop.f32.mrf.mxu1 }
 0x332   : > { %v656_v52 = vmul.f32 %v2528_v50, %v651_v51 }
 0x333   : > { %v2355_v53 = vpop.f32.mrf.mxu1 }
 0x334   : > { %658 = vst.msk [vmem:[#allocation2] sm:$0xf] %vm657_vm5, %v656_v52  ;;  %v986_v53 = vpop.trf.xlu1 }
 0x335   : > { %v2360_v54 = vpop.f32.mrf.mxu1 }
 0x336   : > { %v827_v5 = vsel %vm515_vm4, %v2360_v54, -inf }
 0x337   : > { %v787_v55 = vpop.f32.mrf.mxu1 }
 0x338   : > { %v826_v62 = vsel %vm515_vm4, %v787_v55, -inf }
 0x339   : > { %v2363_v56 = vpop.f32.mrf.mxu1 }
 0x33a   : > { %v829_v7 = vsel %vm515_vm4, %v2363_v56, -inf }
 0x33b   : > { %v797_v57 = vpop.f32.mrf.mxu1 }
 0x33c   : > { %v828_v8 = vsel %vm515_vm4, %v797_v57, -inf }
 0x33d   : > { %v2366_v58 = vpop.f32.mrf.mxu1 }
 0x33e   : > { %v832_v63 = vsel %vm515_vm4, %v2366_v58, -inf }
 0x33f   : > { %v807_v59 = vpop.f32.mrf.mxu1  ;;  %v833_v10 = vmax.f32 %v827_v5, %v832_v63  ;;  %v892_v5 = vrot.slane %v2687_v23, 4 }
 0x340   : > { %v830_v60 = vsel %vm515_vm4, %v807_v59, -inf }
 0x341   : > { %v2369_v61 = vpop.f32.mrf.mxu1  ;;  %v831_v2 = vmax.f32 %v826_v62, %v830_v60  ;;  %v987_v62 = vpop.trf.xlu1 }
 0x342   : > { %v836_v1 = vsel %vm515_vm4, %v2369_v61, -inf }
 0x343   : > { %v817_v3 = vpop.f32.mrf.mxu1  ;;  %v837_v11 = vmax.f32 %v829_v7, %v836_v1  ;;  %v838_v13 = vmax.f32 %v831_v2, %v833_v10 }
 0x344   : > { %v834_v9 = vsel %vm515_vm4, %v817_v3, -inf }
 0x345   : > { %v835_v12 = vmax.f32 %v828_v8, %v834_v9 }
 0x347   : > { %v839_v14 = vmax.f32 %v835_v12, %v837_v11 }
 0x349   : > { %v840_v15 = vmax.f32 %v838_v13, %v839_v14 }
 0x34b   : > { %v841_v16 = vrot.slane %v840_v15, 4 }
 0x34d   : > { %v842_v17 = vmax.f32 %v840_v15, %v841_v16 }
 0x34f   : > { %v843_v18 = vrot.slane %v842_v17, 2 }
 0x351   : > { %v844_v19 = vmax.f32 %v842_v17, %v843_v18 }
 0x353   : > { %v845_v20 = vrot.slane %v844_v19, 1 }
 0x355   : > { %v846_v21 = vmax.f32 %v844_v19, %v845_v20 }
 0x357   : > { %v847_v22 = vsub.f32 %v787_v55, %v846_v21  ;;  %v848_v24 = vsub.f32 %v2360_v54, %v846_v21  ;;  %v849_v26 = vsub.f32 %v797_v57, %v846_v21  ;;  %v850_v27 = vsub.f32 %v2363_v56, %v846_v21 }
 0x358   : > { %v851_v28 = vsub.f32 %v807_v59, %v846_v21  ;;  %v852_v29 = vsub.f32 %v2366_v58, %v846_v21  ;;  %v854_v33 = vsub.f32 %v2369_v61, %v846_v21  ;;  %v853_v35 = vsub.f32 %v817_v3, %v846_v21  ;;  %v988_v3 = vpop.trf.xlu1 }
 0x359   : > { %v855_v30 = vmul.f32 1.442695, %v847_v22  ;;  %v857_v31 = vmul.f32 1.442695, %v848_v24  ;;  %v859_v32 = vmul.f32 1.442695, %v849_v26 }
 0x35a   : > { %v861_v34 = vmul.f32 1.442695, %v850_v27  ;;  %v863_v36 = vmul.f32 1.442695, %v851_v28  ;;  %v865_v37 = vmul.f32 1.442695, %v852_v29 }
 0x35b   : > { %2529 = vpow2.f32 %v855_v30  ;;  %v869_v38 = vmul.f32 1.442695, %v854_v33  ;;  %v867_v39 = vmul.f32 1.442695, %v853_v35 }
 0x35c   : > { %2531 = vpow2.f32 %v857_v31  ;;  %v989_v7 = vpop.trf.xlu1 }
 0x35d   : > { %2533 = vpow2.f32 %v859_v32 }
 0x35e   : > { %2535 = vpow2.f32 %v861_v34 }
 0x35f   : > { %2537 = vpow2.f32 %v863_v36 }
 0x360   : > { %2539 = vpow2.f32 %v865_v37  ;;  %v990_v23 = vpop.trf.xlu1 }
 0x361   : > { %2541 = vpow2.f32 %v869_v38 }
 0x362   : > { %2543 = vpow2.f32 %v867_v39 }
 0x364   : > { %v991_v8 = vpop.trf.xlu1 }
 0x368   : > { %v2530_v41 = vpop.eup %2529 }
 0x369   : > { %v2532_v4 = vpop.eup %2531  ;;  %v871_v43 = vsel %vm515_vm4, %v2530_v41, 0.0 }
 0x36a   : > { %v2534_v44 = vpop.eup %2533  ;;  %v872_v45 = vsel %vm515_vm4, %v2532_v4, 0.0 }
 0x36b   : > { %v2536_v46 = vpop.eup %2535  ;;  %v873_v47 = vadd.f32 %v872_v45, %v871_v43  ;;  %v874_v48 = vsel %vm515_vm4, %v2534_v44, 0.0 }
 0x36c   : > { %v2538_v49 = vpop.eup %2537  ;;  %v876_v52 = vsel %vm515_vm4, %v2536_v46, 0.0 }
 0x36d   : > { %v875_v50 = vadd.f32 %v874_v48, %v873_v47  ;;  %v2540_v51 = vpop.eup %2539  ;;  %v878_v56 = vsel %vm515_vm4, %v2538_v49, 0.0 }
 0x36e   : > { %v2542_v54 = vpop.eup %2541  ;;  %v880_v59 = vsel %vm515_vm4, %v2540_v51, 0.0 }
 0x36f   : > { %v877_v55 = vadd.f32 %v876_v52, %v875_v50  ;;  %2371 = vmatpush3.msra.mxu0 %v2542_v54  ;;  %v2544_v57 = vpop.eup %2543  ;;  %v884_v1 = vsel %vm515_vm4, %v2542_v54, 0.0 }
 0x370   : > { %2372 = vmatprep.subr.mxu0 %v2593_v0  ;;  %v882_v61 = vsel %vm515_vm4, %v2544_v57, 0.0 }
 0x371   : > { %v879_v58 = vadd.f32 %v878_v56, %v877_v55  ;;  %2373 = vmatpush3.msra.mxu0 %v2544_v57 }
 0x372   : > { %2374 = vmatprep.subr.mxu0 %v2593_v0 }
 0x373   : > { %v881_v60 = vadd.f32 %v880_v59, %v879_v58  ;;  %2375 = vmatpush3.msra.mxu0 %v2540_v51 }
 0x374   : > { %2376 = vmatprep.subr.mxu0 %v2593_v0 }
 0x375   : > { %v883_v63 = vadd.f32 %v882_v61, %v881_v60  ;;  %2377 = vmatpush3.msra.mxu0 %v2538_v49 }
 0x376   : > { %2378 = vmatprep.subr.mxu0 %v2593_v0 }
 0x377   : > { %v885_v2 = vadd.f32 %v884_v1, %v883_v63  ;;  %2379 = vmatpush3.msra.mxu0 %v2536_v46 }
 0x378   : > { %2380 = vmatprep.subr.mxu0 %v2593_v0 }
 0x379   : > { %2381 = vmatpush3.msra.mxu0 %v2534_v44  ;;  %v886_v9 = vrot.slane %v885_v2, 4 }
 0x37a   : > { %2382 = vmatprep.subr.mxu0 %v2593_v0 }
 0x37b   : > { %2383 = vmatpush3.msra.mxu0 %v2532_v4  ;;  %v887_v10 = vadd.f32 %v886_v9, %v885_v2 }
 0x37c   : > { %2384 = vmatprep.subr.mxu0 %v2593_v0 }
 0x37d   : > { %2385 = vmatpush3.msra.mxu0 %v2530_v41  ;;  %v888_v11 = vrot.slane %v887_v10, 2 }
 0x37e   : > { %2387 = vmatmul.mubr.msk.f32.vlgmr.msra.gmra.mxu0 %vm515_vm4, %v892_v5  ;;  %2389 = vmatprep.subr.msk.mxu0 %vm406_vm2, %v2669_v6 }
 0x37f   : > { %2390 = vmatpush3.msk.msra.mxu0 %vm406_vm2, %v2669_v6  ;;  %2391 = vmatprep.mubr.msk.f32.mxu0 %vm381_vm3, %v984_v40  ;;  %v889_v12 = vadd.f32 %v888_v11, %v887_v10 }
 0x380   : > { %2436 = vmatprep.subr.mxu0 %v2593_v0 }
 0x381   : > { %v890_v13 = vrot.slane %v889_v12, 1 }
 0x382   : > { %2392 = vmatmul.mubr.msk.f32.vlgmr.msra.gmra.mxu0 %vm381_vm3, %v985_v42 }
 0x383   : > { %2394 = vmatprep.mubr.msk.f32.mxu0 %vm381_vm3, %v986_v53  ;;  %v891_v14 = vadd.f32 %v890_v13, %v889_v12 }
 0x385   : > { %2545 = vrcp.f32 %v891_v14 }
 0x386   : > { %2395 = vmatmul.mubr.msk.f32.gmra.mxu0 %vm381_vm3, %v987_v62 }
 0x387   : > { %2397 = vmatprep.mubr.msk.f32.mxu0 %vm381_vm3, %v988_v3 }
 0x38a   : > { %2398 = vmatmul.mubr.msk.f32.gmra.mxu0 %vm381_vm3, %v989_v7 }
 0x38b   : > { %2400 = vmatprep.mubr.msk.f32.mxu0 %vm381_vm3, %v990_v23  ;;  %v1293_v23 = vpop.trf.xlu1 }
 0x38e   : > { %2401 = vmatmul.mubr.msk.f32.gmra.mxu0 %vm381_vm3, %v991_v8 }
 0x38f   : > { %2452 = vmatprep.mubr.msk.f32.mxu0 %vm2594_vm0, %v2593_v0  ;;  %v1294_v9 = vpop.trf.xlu1 }
 0x392   : > { %v2546_v15 = vpop.eup %2545 }
 0x43e   : > { %v961_v16 = vpop.f32.mrf.mxu0 }
 0x43f   : > { %v966_v17 = vmul.f32 %v2546_v15, %v961_v16 }
 0x440   : > { %v2388_v18 = vpop.f32.mrf.mxu0 }
 0x441   : > { %967 = vst.msk [vmem:[#allocation2 + $0x4] sm:$0xf] %vm657_vm5, %v966_v17 }
 0x442   : > { %v2393_v19 = vpop.f32.mrf.mxu0 }
 0x443   : > { %v1133_v38 = vsel %vm515_vm4, %v2393_v19, -inf }
 0x444   : > { %v1093_v20 = vpop.f32.mrf.mxu0 }
 0x445   : > { %v1132_v33 = vsel %vm515_vm4, %v1093_v20, -inf }
 0x446   : > { %v2396_v21 = vpop.f32.mrf.mxu0 }
 0x447   : > { %v1135_v39 = vsel %vm515_vm4, %v2396_v21, -inf }
 0x448   : > { %v1103_v22 = vpop.f32.mrf.mxu0  ;;  %v2772_v24 = vld [vmem:[#allocation2] sm:$0xff] }
 0x449   : > { %v1590_v26 = vsel %vm515_vm4, %v2772_v24, 0.0  ;;  %v1596_v27 = vmul.f32 %v2772_v24, %v2772_v24  ;;  %v1134_v40 = vsel %vm515_vm4, %v1103_v22, -inf }
 0x44a   : > { %1591 = vadd.xlane.f32.xlu0 %v1590_v26  ;;  %v2399_v28 = vpop.f32.mrf.mxu0 }
 0x44b   : > { %v1598_v29 = vsel %vm515_vm4, %v1596_v27, 0.0  ;;  %v1138_v34 = vsel %vm515_vm4, %v2399_v28, -inf }
 0x44c   : > { %1599 = vadd.xlane.f32.xlu1 %v1598_v29  ;;  %v1113_v30 = vpop.f32.mrf.mxu0  ;;  %v1139_v42 = vmax.f32 %v1133_v38, %v1138_v34  ;;  %v1309_v38 = vrot.slane %v2669_v6, 4 }
 0x44d   : > { %v1136_v31 = vsel %vm515_vm4, %v1113_v30, -inf }
 0x44e   : > { %v2402_v32 = vpop.f32.mrf.mxu0  ;;  %v1137_v36 = vmax.f32 %v1132_v33, %v1136_v31 }
 0x44f   : > { %v1142_v35 = vsel %vm515_vm4, %v2402_v32, -inf }
 0x450   : > { %v1123_v37 = vpop.f32.mrf.mxu0  ;;  %v1143_v4 = vmax.f32 %v1135_v39, %v1142_v35  ;;  %v1144_v44 = vmax.f32 %v1137_v36, %v1139_v42 }
 0x451   : > { %v1140_v41 = vsel %vm515_vm4, %v1123_v37, -inf }
 0x452   : > { %v1141_v43 = vmax.f32 %v1134_v40, %v1140_v41  ;;  %v2818_v41 = vld [vmem:[%s2943_s2] sm:$0xff] }
 0x454   : > { %v1145_v45 = vmax.f32 %v1141_v43, %v1143_v4 }
 0x456   : > { %v1146_v46 = vmax.f32 %v1144_v44, %v1145_v45 }
 0x458   : > { %v1147_v47 = vrot.slane %v1146_v46, 4 }
 0x45a   : > { %v1148_v48 = vmax.f32 %v1146_v46, %v1147_v47 }
 0x45c   : > { %v1149_v49 = vrot.slane %v1148_v48, 2 }
 0x45e   : > { %v1150_v50 = vmax.f32 %v1148_v48, %v1149_v49 }
 0x460   : > { %v1151_v51 = vrot.slane %v1150_v50, 1 }
 0x462   : > { %v1152_v52 = vmax.f32 %v1150_v50, %v1151_v51 }
 0x464   : > { %v1153_v53 = vsub.f32 %v1093_v20, %v1152_v52  ;;  %v1154_v54 = vsub.f32 %v2393_v19, %v1152_v52  ;;  %v1155_v55 = vsub.f32 %v1103_v22, %v1152_v52  ;;  %v1156_v56 = vsub.f32 %v2396_v21, %v1152_v52  ;;  %v1295_v21 = vpop.trf.xlu1 }
 0x465   : > { %v1157_v57 = vsub.f32 %v1113_v30, %v1152_v52  ;;  %v1158_v58 = vsub.f32 %v2399_v28, %v1152_v52  ;;  %v1160_v62 = vsub.f32 %v2402_v32, %v1152_v52  ;;  %v1159_v1 = vsub.f32 %v1123_v37, %v1152_v52 }
 0x466   : > { %v1161_v59 = vmul.f32 1.442695, %v1153_v53  ;;  %v1163_v60 = vmul.f32 1.442695, %v1154_v54  ;;  %v1165_v61 = vmul.f32 1.442695, %v1155_v55 }
 0x467   : > { %v1167_v63 = vmul.f32 1.442695, %v1156_v56  ;;  %v1169_v2 = vmul.f32 1.442695, %v1157_v57  ;;  %v1171_v3 = vmul.f32 1.442695, %v1158_v58 }
 0x468   : > { %2547 = vpow2.f32 %v1161_v59  ;;  %v1175_v5 = vmul.f32 1.442695, %v1160_v62  ;;  %v1173_v7 = vmul.f32 1.442695, %v1159_v1  ;;  %v1296_v33 = vpop.trf.xlu1 }
 0x469   : > { %2549 = vpow2.f32 %v1163_v60 }
 0x46a   : > { %2551 = vpow2.f32 %v1165_v61 }
 0x46b   : > { %2553 = vpow2.f32 %v1167_v63 }
 0x46c   : > { %2555 = vpow2.f32 %v1169_v2  ;;  %v1297_v37 = vpop.trf.xlu1 }
 0x46d   : > { %2557 = vpow2.f32 %v1171_v3 }
 0x46e   : > { %2559 = vpow2.f32 %v1175_v5 }
 0x46f   : > { %2561 = vpow2.f32 %v1173_v7 }
 0x470   : > { %v1298_v39 = vpop.trf.xlu1 }
 0x474   : > { %v1299_v40 = vpop.trf.xlu1 }
 0x475   : > { %v2548_v8 = vpop.eup %2547 }
 0x476   : > { %v2550_v10 = vpop.eup %2549  ;;  %v1177_v11 = vsel %vm515_vm4, %v2548_v8, 0.0 }
 0x477   : > { %v2552_v12 = vpop.eup %2551  ;;  %v1178_v13 = vsel %vm515_vm4, %v2550_v10, 0.0 }
 0x478   : > { %v2554_v14 = vpop.eup %2553  ;;  %v1179_v15 = vadd.f32 %v1178_v13, %v1177_v11  ;;  %v1180_v16 = vsel %vm515_vm4, %v2552_v12, 0.0  ;;  %v1300_v6 = vpop.trf.xlu1 }
 0x479   : > { %v2556_v17 = vpop.eup %2555  ;;  %v1182_v20 = vsel %vm515_vm4, %v2554_v14, 0.0 }
 0x47a   : > { %v1181_v18 = vadd.f32 %v1180_v16, %v1179_v15  ;;  %v2558_v19 = vpop.eup %2557  ;;  %v1184_v27 = vsel %vm515_vm4, %v2556_v17, 0.0 }
 0x47b   : > { %v2560_v22 = vpop.eup %2559  ;;  %v1186_v30 = vsel %vm515_vm4, %v2558_v19, 0.0 }
 0x47c   : > { %v1183_v26 = vadd.f32 %v1182_v20, %v1181_v18  ;;  %2404 = vmatpush3.msra.mxu1 %v2560_v22  ;;  %v2562_v28 = vpop.eup %2561  ;;  %v1190_v35 = vsel %vm515_vm4, %v2560_v22, 0.0 }
 0x47d   : > { %2405 = vmatprep.subr.mxu1 %v2593_v0  ;;  %v1188_v32 = vsel %vm515_vm4, %v2562_v28, 0.0 }
 0x47e   : > { %v1185_v29 = vadd.f32 %v1184_v27, %v1183_v26  ;;  %2406 = vmatpush3.msra.mxu1 %v2562_v28 }
 0x47f   : > { %2407 = vmatprep.subr.mxu1 %v2593_v0 }
 0x480   : > { %v1187_v31 = vadd.f32 %v1186_v30, %v1185_v29  ;;  %2408 = vmatpush3.msra.mxu1 %v2558_v19 }
 0x481   : > { %2409 = vmatprep.subr.mxu1 %v2593_v0 }
 0x482   : > { %v1189_v34 = vadd.f32 %v1188_v32, %v1187_v31  ;;  %2410 = vmatpush3.msra.mxu1 %v2556_v17 }
 0x483   : > { %2411 = vmatprep.subr.mxu1 %v2593_v0 }
 0x484   : > { %v1191_v36 = vadd.f32 %v1190_v35, %v1189_v34  ;;  %2412 = vmatpush3.msra.mxu1 %v2554_v14 }
 0x485   : > { %2413 = vmatprep.subr.mxu1 %v2593_v0 }
 0x486   : > { %2414 = vmatpush3.msra.mxu1 %v2552_v12  ;;  %v1192_v43 = vrot.slane %v1191_v36, 4 }
 0x487   : > { %2415 = vmatprep.subr.mxu1 %v2593_v0 }
 0x488   : > { %2416 = vmatpush3.msra.mxu1 %v2550_v10  ;;  %v1193_v44 = vadd.f32 %v1192_v43, %v1191_v36 }
 0x489   : > { %2417 = vmatprep.subr.mxu1 %v2593_v0 }
 0x48a   : > { %2418 = vmatpush3.msra.mxu1 %v2548_v8  ;;  %v1194_v45 = vrot.slane %v1193_v44, 2 }
 0x48b   : > { %2420 = vmatmul.mubr.msk.f32.vlgmr.msra.gmra.mxu1 %vm515_vm4, %v2689_v25  ;;  %2422 = vmatprep.subr.msk.mxu1 %vm406_vm2, %v1309_v38 }
 0x48c   : > { %2423 = vmatpush3.msk.msra.mxu1 %vm406_vm2, %v1309_v38  ;;  %2424 = vmatprep.mubr.msk.f32.mxu1 %vm381_vm3, %v1293_v23  ;;  %v1195_v46 = vadd.f32 %v1194_v45, %v1193_v44 }
 0x48e   : > { %v1196_v47 = vrot.slane %v1195_v46, 1 }
 0x48f   : > { %2425 = vmatmul.mubr.msk.f32.vlgmr.msra.gmra.mxu1 %vm381_vm3, %v1294_v9 }
 0x490   : > { %2427 = vmatprep.mubr.msk.f32.mxu1 %vm381_vm3, %v1295_v21  ;;  %v1197_v48 = vadd.f32 %v1196_v47, %v1195_v46 }
 0x492   : > { %2563 = vrcp.f32 %v1197_v48 }
 0x493   : > { %2428 = vmatmul.mubr.msk.f32.gmra.mxu1 %vm381_vm3, %v1296_v33 }
 0x494   : > { %2430 = vmatprep.mubr.msk.f32.mxu1 %vm381_vm3, %v1297_v37 }
 0x497   : > { %2431 = vmatmul.mubr.msk.f32.gmra.mxu1 %vm381_vm3, %v1298_v39 }
 0x498   : > { %2433 = vmatprep.mubr.msk.f32.mxu1 %vm381_vm3, %v1299_v40 }
 0x49b   : > { %2434 = vmatmul.mubr.msk.f32.gmra.mxu1 %vm381_vm3, %v1300_v6 }
 0x49f   : > { %v2564_v49 = vpop.eup %2563 }
 0x4d5   : > { %v1600_v42 = vpop.xlane.xlu1 %1599 }
 0x4d6   : > { %v1619_v4 = vmul.f32 %v1600_v42, %v2818_v41 }
 0x4d8   : > { %1623 = vrot.lane.b32.xlu0 %v1619_v4, %s2595_s11 }
 0x54b   : > { %v1267_v50 = vpop.f32.mrf.mxu1 }
 0x54c   : > { %v1272_v51 = vmul.f32 %v2564_v49, %v1267_v50 }
 0x54d   : > { %v2421_v52 = vpop.f32.mrf.mxu1 }
 0x54e   : > { %1273 = vst.msk [vmem:[#allocation2 + $0x8] sm:$0xf] %vm657_vm5, %v1272_v51 }
 0x54f   : > { %v2426_v53 = vpop.f32.mrf.mxu1 }
 0x550   : > { %v1442_v3 = vsel %vm515_vm4, %v2426_v53, -inf }
 0x551   : > { %v1402_v54 = vpop.f32.mrf.mxu1 }
 0x552   : > { %v1441_v61 = vsel %vm515_vm4, %v1402_v54, -inf }
 0x553   : > { %v2429_v55 = vpop.f32.mrf.mxu1 }
 0x554   : > { %v1444_v5 = vsel %vm515_vm4, %v2429_v55, -inf }
 0x555   : > { %v1412_v56 = vpop.f32.mrf.mxu1 }
 0x556   : > { %v1443_v7 = vsel %vm515_vm4, %v1412_v56, -inf }
 0x557   : > { %v2432_v57 = vpop.f32.mrf.mxu1 }
 0x558   : > { %v1447_v62 = vsel %vm515_vm4, %v2432_v57, -inf }
 0x559   : > { %v1422_v58 = vpop.f32.mrf.mxu1  ;;  %v1448_v8 = vmax.f32 %v1442_v3, %v1447_v62 }
 0x55a   : > { %v1445_v59 = vsel %vm515_vm4, %v1422_v58, -inf }
 0x55b   : > { %v2435_v60 = vpop.f32.mrf.mxu1  ;;  %v1446_v1 = vmax.f32 %v1441_v61, %v1445_v59  ;;  %v1507_v61 = vrot.slane %v2689_v25, 4 }
 0x55c   : > { %v1451_v63 = vsel %vm515_vm4, %v2435_v60, -inf }
 0x55d   : > { %v1432_v2 = vpop.f32.mrf.mxu1  ;;  %v1452_v9 = vmax.f32 %v1444_v5, %v1451_v63  ;;  %v1453_v11 = vmax.f32 %v1446_v1, %v1448_v8 }
 0x55e   : > { %v1449_v23 = vsel %vm515_vm4, %v1432_v2, -inf }
 0x55f   : > { %v1450_v10 = vmax.f32 %v1443_v7, %v1449_v23 }
 0x561   : > { %v1454_v12 = vmax.f32 %v1450_v10, %v1452_v9 }
 0x563   : > { %v1455_v13 = vmax.f32 %v1453_v11, %v1454_v12  ;;  %v1586_v12 = vld [vmem:[%s2943_s2 + $0x8] sm:$0xff] }
 0x565   : > { %v1456_v14 = vrot.slane %v1455_v13, 4 }
 0x567   : > { %v1457_v15 = vmax.f32 %v1455_v13, %v1456_v14 }
 0x569   : > { %v1458_v16 = vrot.slane %v1457_v15, 2 }
 0x56b   : > { %v1459_v17 = vmax.f32 %v1457_v15, %v1458_v16 }
 0x56d   : > { %v1460_v18 = vrot.slane %v1459_v17, 1 }
 0x56f   : > { %v1461_v19 = vmax.f32 %v1459_v17, %v1460_v18  ;;  %v1592_v17 = vpop.xlane.xlu0 %1591 }
 0x570   : > { %v1604_v18 = vmul.f32 %v1592_v17, %v2818_v41 }
 0x571   : > { %v1462_v20 = vsub.f32 %v1402_v54, %v1461_v19  ;;  %v1463_v21 = vsub.f32 %v2426_v53, %v1461_v19  ;;  %v1464_v22 = vsub.f32 %v1412_v56, %v1461_v19  ;;  %v1465_v26 = vsub.f32 %v2429_v55, %v1461_v19 }
 0x572   : > { %v1466_v27 = vsub.f32 %v1422_v58, %v1461_v19  ;;  %v1467_v28 = vsub.f32 %v2432_v57, %v1461_v19  ;;  %v1469_v32 = vsub.f32 %v2435_v60, %v1461_v19  ;;  %v1468_v34 = vsub.f32 %v1432_v2, %v1461_v19 }
 0x573   : > { %v1470_v29 = vmul.f32 1.442695, %v1462_v20  ;;  %v1472_v30 = vmul.f32 1.442695, %v1463_v21  ;;  %v1474_v31 = vmul.f32 1.442695, %v1464_v22 }
 0x574   : > { %v1476_v33 = vmul.f32 1.442695, %v1465_v26  ;;  %v1478_v35 = vmul.f32 1.442695, %v1466_v27  ;;  %v1480_v36 = vmul.f32 1.442695, %v1467_v28  ;;  %v1624_v27 = vpop.permute.xlu0 %1623 }
 0x575   : > { %2565 = vpow2.f32 %v1470_v29  ;;  %v1484_v37 = vmul.f32 1.442695, %v1469_v32  ;;  %v1482_v38 = vmul.f32 1.442695, %v1468_v34  ;;  %v1607_v20 = vsel %vm1606_vm6, %v1604_v18, 0.0 }
 0x576   : > { %2567 = vpow2.f32 %v1472_v30  ;;  %v2875_v22 = vld [vmem:[%s2944_s3] sm:$0x1]  ;;  %v1629_v28 = vsel %vm1606_vm6, %v1624_v27, 0.0  ;;  %v1589_v27 = vld [vmem:[%s2944_s3 + $0x2] sm:$0x1] }
 0x577   : > { %2569 = vpow2.f32 %v1474_v31  ;;  %v1662_v26 = vsel %vm1661_vm7, %v2875_v22, 0.0 }
 0x578   : > { %2571 = vpow2.f32 %v1476_v33 }
 0x579   : > { %2573 = vpow2.f32 %v1478_v35  ;;  %v1672_v35 = vmul.f32 %v2875_v22, %v2875_v22 }
 0x57a   : > { %2575 = vpow2.f32 %v1480_v36 }
 0x57b   : > { %2577 = vpow2.f32 %v1484_v37  ;;  %v1673_v37 = vsel %vm1661_vm7, %v1672_v35, 0.0 }
 0x57c   : > { %2579 = vpow2.f32 %v1482_v38 }
 0x582   : > { %v2566_v39 = vpop.eup %2565 }
 0x583   : > { %v2568_v40 = vpop.eup %2567  ;;  %v1486_v6 = vsel %vm515_vm4, %v2566_v39, 0.0 }
 0x584   : > { %v2570_v42 = vpop.eup %2569  ;;  %v1487_v4 = vsel %vm515_vm4, %v2568_v40, 0.0 }
 0x585   : > { %v2572_v43 = vpop.eup %2571  ;;  %v1488_v44 = vadd.f32 %v1487_v4, %v1486_v6  ;;  %v1489_v45 = vsel %vm515_vm4, %v2570_v42, 0.0 }
 0x586   : > { %v2574_v46 = vpop.eup %2573  ;;  %v1491_v49 = vsel %vm515_vm4, %v2572_v43, 0.0 }
 0x587   : > { %v1490_v47 = vadd.f32 %v1489_v45, %v1488_v44  ;;  %v2576_v48 = vpop.eup %2575  ;;  %v1493_v52 = vsel %vm515_vm4, %v2574_v46, 0.0 }
 0x588   : > { %v2578_v50 = vpop.eup %2577  ;;  %v1495_v55 = vsel %vm515_vm4, %v2576_v48, 0.0 }
 0x589   : > { %v1492_v51 = vadd.f32 %v1491_v49, %v1490_v47  ;;  %2437 = vmatpush3.msra.mxu0 %v2578_v50  ;;  %v2580_v53 = vpop.eup %2579  ;;  %v1499_v59 = vsel %vm515_vm4, %v2578_v50, 0.0 }
 0x58a   : > { %2438 = vmatprep.subr.mxu0 %v2593_v0  ;;  %v1497_v57 = vsel %vm515_vm4, %v2580_v53, 0.0 }
 0x58b   : > { %v1494_v54 = vadd.f32 %v1493_v52, %v1492_v51  ;;  %2439 = vmatpush3.msra.mxu0 %v2580_v53 }
 0x58c   : > { %2440 = vmatprep.subr.mxu0 %v2593_v0 }
 0x58d   : > { %v1496_v56 = vadd.f32 %v1495_v55, %v1494_v54  ;;  %2441 = vmatpush3.msra.mxu0 %v2576_v48 }
 0x58e   : > { %2442 = vmatprep.subr.mxu0 %v2593_v0 }
 0x58f   : > { %v1498_v58 = vadd.f32 %v1497_v57, %v1496_v56  ;;  %2443 = vmatpush3.msra.mxu0 %v2574_v46 }
 0x590   : > { %2444 = vmatprep.subr.mxu0 %v2593_v0 }
 0x591   : > { %v1500_v60 = vadd.f32 %v1499_v59, %v1498_v58  ;;  %2445 = vmatpush3.msra.mxu0 %v2572_v43 }
 0x592   : > { %2446 = vmatprep.subr.mxu0 %v2593_v0 }
 0x593   : > { %2447 = vmatpush3.msra.mxu0 %v2570_v42  ;;  %v1501_v62 = vrot.slane %v1500_v60, 4 }
 0x594   : > { %2448 = vmatprep.subr.mxu0 %v2593_v0 }
 0x595   : > { %2449 = vmatpush3.msra.mxu0 %v2568_v40  ;;  %v1502_v63 = vadd.f32 %v1501_v62, %v1500_v60 }
 0x596   : > { %2450 = vmatprep.subr.mxu0 %v2593_v0 }
 0x597   : > { %2451 = vmatpush3.msra.mxu0 %v2566_v39  ;;  %v1503_v1 = vrot.slane %v1502_v63, 2 }
 0x598   : > { %2453 = vmatmul.mubr.msk.f32.vlgmr.msra.gmra.mxu0 %vm515_vm4, %v1507_v61 }
 0x599   : > { %v1504_v2 = vadd.f32 %v1503_v1, %v1502_v63 }
 0x59b   : > { %v1505_v3 = vrot.slane %v1504_v2, 1 }
 0x59d   : > { %v1506_v5 = vadd.f32 %v1505_v3, %v1504_v2 }
 0x59f   : > { %2581 = vrcp.f32 %v1506_v5 }
 0x5ac   : > { %v2582_v7 = vpop.eup %2581 }
 0x658   : > { %v1576_v23 = vpop.f32.mrf.mxu0 }
 0x659   : > { %v1581_v8 = vmul.f32 %v2582_v7, %v1576_v23 }
 0x65a   : > { %v2454_v9 = vpop.f32.mrf.mxu0 }
 0x65b   : > { %1582 = vst.msk [vmem:[#allocation2 + $0xc] sm:$0xf] %vm657_vm5, %v1581_v8 }
 0x662   : > { %v2849_v10 = vld [vmem:[#allocation2 + $0x8] sm:$0xff] }
 0x663   : > { %2455 = vmatprep.subr.mxu0 %v2849_v10  ;;  %2469 = vmatprep.subr.mxu1 %v2849_v10  ;;  %v1593_v0 = vsel %vm515_vm4, %v2849_v10, 0.0  ;;  %v1597_v25 = vmul.f32 %v2849_v10, %v2849_v10 }
 0x664   : > { %2456 = vmatpush3.msra.mxu0 %v2849_v10  ;;  %2470 = vmatpush3.msra.mxu1 %v2849_v10 }
 0x665   : > { %1594 = vadd.xlane.f32.xlu1 %v1593_v0  ;;  %2457 = vmatprep.subr.mxu0 %v2772_v24  ;;  %v1601_v11 = vsel %vm515_vm4, %v1597_v25, 0.0 }
 0x666   : > { %2471 = vmatprep.subr.mxu1 %v2772_v24  ;;  %2458 = vmatpush3.msra.mxu0 %v2772_v24 }
 0x667   : > { %2472 = vmatpush3.msra.mxu1 %v2772_v24  ;;  %2462 = vmatprep.subr.mxu0 %v2849_v10 }
 0x669   : > { %1602 = vadd.xlane.f32.xlu1 %v1601_v11  ;;  %v1717_v11 = vlaneseq }
 0x6ee   : > { %v1595_v13 = vpop.xlane.xlu1 %1594 }
 0x6ef   : > { %v1605_v14 = vmul.f32 %v1595_v13, %v1586_v12  ;;  %v1588_v13 = vld [vmem:[%s2944_s3 + $0x1] sm:$0x1] }
 0x6f1   : > { %1645 = vrot.lane.b32.xlu0 %v1605_v14, %s2596_s14  ;;  %v1608_v19 = vsel %vm1606_vm6, %v1605_v14, 0.0  ;;  %v1709_v14 = vld [vmem:[%s2945_s4] sm:$0xf] }
 0x6f2   : > { %v1603_v15 = vpop.xlane.xlu1 %1602  ;;  %v1609_v21 = vadd.f32 %v1608_v19, %v1607_v20 }
 0x6f3   : > { %v1620_v16 = vmul.f32 %v1603_v15, %v1586_v12  ;;  %v1718_v12 = vshrl.u32 %v1717_v11, 7 }
 0x6f5   : > { %1625 = vrot.lane.b32.xlu1 %v1620_v16, %s2595_s11  ;;  %v1719_v16 = vsub.s32 0, %v1718_v12  ;;  %v1910_v17 = vsub.s32 2, %v1718_v12  ;;  %v1820_v19 = vsub.s32 1, %v1718_v12  ;;  %v2000_v35 = vsub.s32 3, %v1718_v12 }
 0x6f9   : > { %1643 = vrot.lane.b32.xlu1 %v1604_v18, %s2596_s14 }
 0x71d   : > { %1610 = vadd.xlane.f32.xlu1 %v1609_v21 }
 0x721   : > { %1663 = vadd.xlane.f32.xlu1 %v1662_v26 }
 0x763   : > { %v1646_v30 = vpop.permute.xlu0 %1645 }
 0x764   : > { %v1650_v33 = vsel %vm1606_vm6, %v1646_v30, 0.0 }
 0x767   : > { %v1626_v41 = vpop.permute.xlu1 %1625 }
 0x768   : > { %v1630_v29 = vsel %vm1606_vm6, %v1626_v41, 0.0  ;;  %v1708_v41 = vld [vmem:[%s2946_s5 + $0x8] sm:$0xff] }
 0x769   : > { %v1631_v31 = vadd.f32 %v1630_v29, %v1629_v28 }
 0x76b   : > { %1632 = vadd.xlane.f32.xlu0 %v1631_v31  ;;  %v1644_v32 = vpop.permute.xlu1 %1643  ;;  %v1707_v31 = vld [vmem:[%s2946_s5] sm:$0xff] }
 0x76c   : > { %v1649_v34 = vsel %vm1606_vm6, %v1644_v32, 0.0 }
 0x76d   : > { %v1651_v36 = vadd.f32 %v1650_v33, %v1649_v34 }
 0x76f   : > { %1652 = vadd.xlane.f32.xlu0 %v1651_v36 }
 0x773   : > { %1674 = vadd.xlane.f32.xlu0 %v1673_v37 }
 0x7a6   : > { %v1611_v38 = vpop.xlane.xlu1 %1610 }
 0x7a7   : > { %v1612_v39 = vrot.slane %v1611_v38, 4 }
 0x7a9   : > { %v1613_v40 = vadd.f32 %v1612_v39, %v1611_v38 }
 0x7aa   : > { %v1664_v44 = vpop.xlane.xlu1 %1663 }
 0x7ab   : > { %v1614_v6 = vrot.slane %v1613_v40, 2  ;;  %v1665_v45 = vrot.slane %v1664_v44, 4 }
 0x7ad   : > { %v1615_v42 = vadd.f32 %v1614_v6, %v1613_v40  ;;  %v1666_v47 = vadd.f32 %v1665_v45, %v1664_v44 }
 0x7af   : > { %v1616_v4 = vrot.slane %v1615_v42, 1  ;;  %v1667_v51 = vrot.slane %v1666_v47, 2 }
 0x7b1   : > { %v1617_v43 = vadd.f32 %v1616_v4, %v1615_v42  ;;  %v1668_v57 = vadd.f32 %v1667_v51, %v1666_v47 }
 0x7b3   : > { %2483 = vpush %v1617_v43  ;;  %v1669_v1 = vrot.slane %v1668_v57, 1 }
 0x7b5   : > { %v1670_v23 = vadd.f32 %v1669_v1, %v1668_v57 }
 0x7e4   : > { %s2484_s17 = spop %2483 }
 0x7f4   : > { %v1633_v46 = vpop.xlane.xlu0 %1632 }
 0x7f5   : > { %v1634_v48 = vrot.slane %v1633_v46, 4 }
 0x7f7   : > { %v1635_v49 = vadd.f32 %v1634_v48, %v1633_v46 }
 0x7f8   : > { %v1653_v50 = vpop.xlane.xlu0 %1652 }
 0x7f9   : > { %v1636_v52 = vrot.slane %v1635_v49, 2  ;;  %v1654_v53 = vrot.slane %v1653_v50, 4 }
 0x7fb   : > { %v1655_v54 = vadd.f32 %v1654_v53, %v1653_v50  ;;  %v1637_v55 = vadd.f32 %v1636_v52, %v1635_v49 }
 0x7fc   : > { %v1675_v56 = vpop.xlane.xlu0 %1674 }
 0x7fd   : > { %v1656_v58 = vrot.slane %v1655_v54, 2  ;;  %v1638_v59 = vrot.slane %v1637_v55, 1  ;;  %v1676_v60 = vrot.slane %v1675_v56, 4 }
 0x7ff   : > { %v1639_v61 = vadd.f32 %v1638_v59, %v1637_v55  ;;  %v1677_v62 = vadd.f32 %v1676_v60, %v1675_v56  ;;  %v1657_v63 = vadd.f32 %v1656_v58, %v1655_v54 }
 0x801   : > { %2485 = vpush %v1639_v61  ;;  %v1678_v2 = vrot.slane %v1677_v62, 2  ;;  %v1658_v3 = vrot.slane %v1657_v63, 1 }
 0x803   : > { %v1659_v5 = vadd.f32 %v1658_v3, %v1657_v63  ;;  %v1679_v7 = vadd.f32 %v1678_v2, %v1677_v62 }
 0x805   : > { %2487 = vpush %v1659_v5  ;;  %v1680_v8 = vrot.slane %v1679_v7, 1 }
 0x806   : > { %2489 = vpush %v1670_v23 }
 0x807   : > { %v1681_v9 = vadd.f32 %v1680_v8, %v1679_v7 }
 0x809   : > { %2491 = vpush %v1681_v9 }
 0x832   : > { %s2486_s18 = spop %2485 }
 0x836   : > { %s2488_s19 = spop %2487 }
 0x837   : > { %s2490_s20 = spop %2489 }
 0x838   : > { %s1683_s23 = smul.f32 256.0, %s2490_s20 }
 0x83a   : > { %s1684_s24 = sadd.f32 %s2484_s17, %s1683_s23  ;;  %s2492_s29 = spop %2491 }
 0x83c   : > { %s2886_s25 = smul.f32 0.00024414063, %s1684_s24 }
 0x83e   : > { %s1692_s26 = smul.f32 2.0, %s2886_s25  ;;  %v1712_v15 = vstv %s2886_s25 }
 0x83f   : > { %s1688_s27 = smul.f32 %s2484_s17, %s2886_s25  ;;  %v1713_v21 = vsub.f32 %v2875_v22, %v1712_v15 }
 0x840   : > { %s1693_s28 = smul.f32 %s2490_s20, %s1692_s26 }
 0x841   : > { %s1689_s30 = ssub.f32 %s2488_s19, %s1688_s27  ;;  %s1695_s7 = smul.f32 16.0, %s2886_s25 }
 0x842   : > { %s1694_s8 = ssub.f32 %s2492_s29, %s1693_s28 }
 0x843   : > { %s1690_s9 = smul.f32 2.0, %s1689_s30  ;;  %s2216_s30 = sshll.u32 %s2949_s22, 6 }
 0x844   : > { %s1696_s10 = smul.f32 %s1695_s7, %s2886_s25 }
 0x845   : > { %s1691_s12 = sadd.f32 %s2486_s18, %s1690_s9  ;;  %s251_s9 = scalar_lea.vmem %s2947_s6, %s2216_s30 }
 0x846   : > { %s1697_s11 = sadd.f32 %s1696_s10, %s1694_s8 }
 0x848   : > { %s1698_s13 = smul.f32 256.0, %s1697_s11 }
 0x84a   : > { %s1699_s14 = sadd.f32 %s1698_s13, %s1691_s12 }
 0x84c   : > { %s1702_s15 = smul.f32 0.00024414063, %s1699_s14 }
 0x84e   : > { %s1703_s16 = sadd.f32 1e-05, %s1702_s15 }
 0x850   : > { %v1704_v0 = vstv %s1703_s16 }
 0x851   : > { %2583 = vrsqrt.f32 %v1704_v0 }
 0x85e   : > { %v2584_v25 = vpop.eup %2583 }
 0x85f   : > { %2493 = vpush %v2584_v25 }
 0x890   : > { %s2494_s18 = spop %2493 }
 0x891   : > { %v1710_v18 = vstv %s2494_s18 }
 0x892   : > { %v1711_v20 = vmul.f32 %v1710_v18, %v1709_v14  ;;  %v1714_v26 = vmul.f32 %v1710_v18, %v1588_v13 }
 0x894   : > { %v1715_v28 = vmul.f32 %v1714_v26, %v1713_v21  ;;  %v1732_v29 = vrot.slane %v1711_v20, %v1719_v16  ;;  %v1911_v30 = vrot.slane %v1711_v20, %v1910_v17  ;;  %v1821_v32 = vrot.slane %v1711_v20, %v1820_v19 }
 0x895   : > { %v2001_v40 = vrot.slane %v1711_v20, %v2000_v35 }
 0x896   : > { %v1716_v33 = vadd.f32 %v1715_v28, %v1589_v27  ;;  %v1734_v34 = vmul.f32 %v1732_v29, %v1708_v41  ;;  %v1913_v22 = vmul.f32 %v1911_v30, %v1708_v41  ;;  %v1733_v36 = vmul.f32 %v1732_v29, %v1707_v31 }
 0x897   : > { %v1912_v37 = vmul.f32 %v1911_v30, %v1707_v31  ;;  %v1822_v39 = vmul.f32 %v1821_v32, %v1707_v31  ;;  %v1823_v44 = vmul.f32 %v1821_v32, %v1708_v41  ;;  %v2002_v45 = vmul.f32 %v2001_v40, %v1707_v31 }
 0x898   : > { %v1720_v38 = vrot.slane %v1716_v33, %v1719_v16  ;;  %2459 = vmatprep.mubr.msk.f32.mxu0 %vm282_vm1, %v1733_v36  ;;  %v2003_v46 = vmul.f32 %v2001_v40, %v1708_v41 }
 0x899   : > { %2473 = vmatprep.mubr.msk.f32.mxu1 %vm282_vm1, %v1912_v37  ;;  %2460 = vmatmul.mubr.msk.f32.vlgmr.msra.gmra.mxu0 %vm282_vm1, %v1734_v34 }
 0x89a   : > { %2474 = vmatmul.mubr.msk.f32.vlgmr.msra.gmra.mxu1 %vm282_vm1, %v1913_v22  ;;  %v1722_v6 = vmul.f32 %v1720_v38, %v1708_v41  ;;  %v1721_v42 = vmul.f32 %v1720_v38, %v1707_v31  ;;  %2463 = vmatpush3.msra.mxu0 %v2849_v10 }
 0x89b   : > { %2466 = vmatprep.mubr.msk.f32.mxu0 %vm282_vm1, %v1822_v39  ;;  %2464 = vmatprep.subr.mxu0 %v2772_v24 }
 0x89c   : > { %v1726_v4 = vsel %vm282_vm1, %v1722_v6, 0.0  ;;  %v1723_v43 = vsel %vm282_vm1, %v1721_v42, 0.0  ;;  %2465 = vmatpush3.msra.mxu0 %v2772_v24 }
 0x89d   : > { %1727 = vadd.xlane.f32.xlu0 %v1726_v4  ;;  %2476 = vmatprep.subr.mxu0 %v2849_v10 }
 0x89e   : > { %1724 = vadd.xlane.f32.xlu1 %v1723_v43  ;;  %2467 = vmatmul.mubr.msk.f32.vlgmr.msra.gmra.mxu0 %vm282_vm1, %v1823_v44 }
 0x89f   : > { %2477 = vmatpush3.msra.mxu0 %v2849_v10  ;;  %2480 = vmatprep.mubr.msk.f32.mxu0 %vm282_vm1, %v2002_v45 }
 0x8a0   : > { %2478 = vmatprep.subr.mxu0 %v2772_v24 }
 0x8a1   : > { %2479 = vmatpush3.msra.mxu0 %v2772_v24 }
 0x8a2   : > { %2481 = vmatmul.mubr.msk.f32.vlgmr.msra.gmra.mxu0 %vm282_vm1, %v2003_v46 }
 0x926   : > { %v1728_v47 = vpop.xlane.xlu0 %1727 }
 0x927   : > { %v1725_v50 = vpop.xlane.xlu1 %1724 }
 0x959   : > { %v2461_v48 = vpop.f32.mrf.mxu0 }
 0x95a   : > { %v2475_v49 = vpop.f32.mrf.mxu1  ;;  %v1813_v51 = vadd.f32 %v2461_v48, %v1728_v47 }
 0x95b   : > { %v1992_v10 = vadd.f32 %v2475_v49, %v1728_v47  ;;  %v1807_v52 = vpop.f32.mrf.mxu0 }
 0x95c   : > { %v1986_v53 = vpop.f32.mrf.mxu1  ;;  %1817 = vst.msk [vmem:[%s251_s9 + $0x8] sm:$0xff] %vm515_vm4, %v1813_v51  ;;  %v1808_v24 = vadd.f32 %v1807_v52, %v1725_v50 }
 0x95d   : > { %2208 = vst.msk [vmem:[%s251_s9 + $0x28] sm:$0xff] %vm515_vm4, %v1992_v10  ;;  %v1987_v54 = vadd.f32 %v1986_v53, %v1725_v50 }
 0x95e   : > { %1816 = vst.msk [vmem:[%s251_s9] sm:$0xff] %vm515_vm4, %v1808_v24  ;;  %v2468_v55 = vpop.f32.mrf.mxu0 }
 0x95f   : > { %2207 = vst.msk [vmem:[%s251_s9 + $0x20] sm:$0xff] %vm515_vm4, %v1987_v54  ;;  %v1902_v56 = vadd.f32 %v2468_v55, %v1728_v47 }
 0x960   : > { %v1896_v57 = vpop.f32.mrf.mxu0 }
 0x961   : > { %2204 = vst.msk [vmem:[%s251_s9 + $0x18] sm:$0xff] %vm515_vm4, %v1902_v56  ;;  %v1897_v58 = vadd.f32 %v1896_v57, %v1725_v50 }
 0x962   : > { %v2482_v59 = vpop.f32.mrf.mxu0 }
 0x963   : > { %2203 = vst.msk [vmem:[%s251_s9 + $0x10] sm:$0xff] %vm515_vm4, %v1897_v58  ;;  %v2082_v60 = vadd.f32 %v2482_v59, %v1728_v47 }
 0x964   : > { %v2076_v61 = vpop.f32.mrf.mxu0 }
 0x965   : > { %2212 = vst.msk [vmem:[%s251_s9 + $0x38] sm:$0xff] %vm515_vm4, %v2082_v60  ;;  %v2077_v62 = vadd.f32 %v2076_v61, %v1725_v50 }
 0x967   : > { %2211 = vst.msk [vmem:[%s251_s9 + $0x30] sm:$0xff] %vm515_vm4, %v2077_v62 }
 0x968 PF: > { %s16_s21 = sadd.s32 1, %s2591_s21  }
 0x969   : > { %p13_p4 = scmp.ge.s32.totalorder %s16_s21, 4  }
 0x96b   :  { %15 = sbr.rel (!%p13_p4) target bundleno = 1 (0x1), region = 77 }

</bundles_post_ra>
